<compile_context>
chip_gen: v7x
topology: tpu7x:2x2x1
jax: 0.10.0
libtpu: 0.0.40
codegen_flags: <defaults>
</compile_context>

<pallas_src>
import functools

import jax
import jax.numpy as jnp
from jax import lax
from jax.experimental import pallas as pl
from jax.experimental.pallas import tpu as pltpu


def _round_up(n, m):
    return ((n + m - 1) // m) * m


def _pick_tile(dim, cap, mult):
    """Largest tile <= cap that divides `dim` and is a multiple of `mult`;
    falls back to the full dimension (full-extent blocks are always layout-legal)."""
    cap = min(cap, dim)
    t = cap - cap % mult
    while t >= mult:
        if dim % t == 0:
            return t
        t -= mult
    return dim


# ----------------------------------------------------------------------------
# Tiled matmul + bias:  y = x @ w + b      (f32 accumulator, bias added once)
# ----------------------------------------------------------------------------
def _linear_bias_kernel(x_ref, w_ref, b_ref, o_ref, acc_ref):
    k = pl.program_id(2)

    @pl.when(k == 0)
    def _():
        acc_ref[...] = jnp.zeros_like(acc_ref)

    # Native/compute-dtype MXU operands (bf16 by default), f32 accumulation.
    acc_ref[...] += jnp.dot(x_ref[...], w_ref[...],
                            preferred_element_type=jnp.float32)

    @pl.when(k == pl.num_programs(2) - 1)
    def _():
        o_ref[...] = (acc_ref[...] + b_ref[...]).astype(o_ref.dtype)


def _linear(x2d, w, b, *, out_dtype, tm_cap=512, tn_cap=512, tk_cap=1024):
    M, K = x2d.shape
    Kw, N = w.shape
    assert K == Kw
    tm = _pick_tile(M, tm_cap, 16)    # sublane dim: multiple of 16 (bf16-friendly)
    tn = _pick_tile(N, tn_cap, 128)   # lane dim: multiple of 128 or full
    tk = _pick_tile(K, tk_cap, 128)   # reduction: full K when it fits
    grid = (M // tm, N // tn, K // tk)

    return pl.pallas_call(
        _linear_bias_kernel,
        out_shape=jax.ShapeDtypeStruct((M, N), out_dtype),
        grid=grid,
        in_specs=[
            pl.BlockSpec((tm, tk), lambda i, j, k: (i, k)),
            pl.BlockSpec((tk, tn), lambda i, j, k: (k, j)),
            pl.BlockSpec((1, tn), lambda i, j, k: (0, j)),
        ],
        out_specs=pl.BlockSpec((tm, tn), lambda i, j, k: (i, j)),
        scratch_shapes=[pltpu.VMEM((tm, tn), jnp.float32)],
        compiler_params=pltpu.CompilerParams(
            dimension_semantics=("parallel", "parallel", "arbitrary"),
            vmem_limit_bytes=48 * 1024 * 1024),
    )(x2d, w, b.reshape(1, N).astype(jnp.float32))


# ----------------------------------------------------------------------------
# Flash attention reading q/k/v directly out of the fused (B, N, 3*H*d) qkv
# matrix (head split via index_map) and writing the head-merged (B, N, D) output.
# ----------------------------------------------------------------------------
def _flash_attn_kernel(q_ref, k_ref, v_ref, o_ref, m_sc, l_sc, acc_sc, *,
                       scale, n_real, tk, need_mask):
    kv = pl.program_id(3)

    @pl.when(kv == 0)
    def _():
        m_sc[...] = jnp.full_like(m_sc, -jnp.inf)
        l_sc[...] = jnp.zeros_like(l_sc)
        acc_sc[...] = jnp.zeros_like(acc_sc)

    # Fold the softmax scale into q once per q tile (tq*d mults) instead of
    # multiplying the (tq, tk) score matrix every kv step.
    q = (q_ref[0].astype(jnp.float32) * scale).astype(q_ref.dtype)   # (tq, d)
    k = k_ref[0]                                                      # (tk, d)
    v = v_ref[0]                                                      # (tk, d)

    # s = q @ k^T, f32 accumulation on the MXU, operands in compute dtype.
    s = lax.dot_general(q, k, (((1,), (1,)), ((), ())),
                        preferred_element_type=jnp.float32)           # (tq, tk)

    if need_mask:  # static flag: mask out padded key columns (token padding)
        col = kv * tk + lax.broadcasted_iota(jnp.int32, s.shape, 1)
        s = jnp.where(col < n_real, s, jnp.float32(-1e30))

    m_prev = m_sc[...]
    m_new = jnp.maximum(m_prev, s.max(axis=-1, keepdims=True))
    alpha = jnp.exp(m_prev - m_new)
    p = jnp.exp(s - m_new)
    l_sc[...] = alpha * l_sc[...] + p.sum(axis=-1, keepdims=True)
    acc_sc[...] = alpha * acc_sc[...] + jnp.dot(
        p.astype(v.dtype), v, preferred_element_type=jnp.float32)
    m_sc[...] = m_new

    @pl.when(kv == pl.num_programs(3) - 1)
    def _():
        inv_l = pl.reciprocal(l_sc[...], approx=True)   # EUP slot, ~free
        o_ref[0] = (acc_sc[...] * inv_l).astype(o_ref.dtype)


def _flash_attention(qkv, *, heads, scale, n_real, tq, tk, out_dtype):
    """qkv: (B, N_pad, 3*H*d) with column layout (qkv, h, d).

    Returns the head-merged attention output (B, N_pad, H*d) — no transposes."""
    B, N_pad, threeD = qkv.shape
    D = threeD // 3
    d = D // heads
    grid = (B, heads, N_pad // tq, N_pad // tk)

    kernel = functools.partial(_flash_attn_kernel, scale=scale, n_real=n_real,
                               tk=tk, need_mask=(N_pad != n_real))

    return pl.pallas_call(
        kernel,
        out_shape=jax.ShapeDtypeStruct((B, N_pad, D), out_dtype),
        grid=grid,
        in_specs=[
            # q / k / v for head h are column blocks h, H+h, 2H+h (block width d).
            pl.BlockSpec((1, tq, d), lambda b, h, qi, ki: (b, qi, h)),
            pl.BlockSpec((1, tk, d), lambda b, h, qi, ki: (b, ki, heads + h)),
            pl.BlockSpec((1, tk, d), lambda b, h, qi, ki: (b, ki, 2 * heads + h)),
        ],
        # 'b h n d -> b n (h d)' merge fused into the out_spec.
        out_specs=pl.BlockSpec((1, tq, d), lambda b, h, qi, ki: (b, qi, h)),
        scratch_shapes=[
            pltpu.VMEM((tq, 1), jnp.float32),   # running max
            pltpu.VMEM((tq, 1), jnp.float32),   # running sum
            pltpu.VMEM((tq, d), jnp.float32),   # output accumulator
        ],
        compiler_params=pltpu.CompilerParams(
            dimension_semantics=("parallel", "parallel", "parallel", "arbitrary"),
            vmem_limit_bytes=48 * 1024 * 1024),
    )(qkv, qkv, qkv)


# ----------------------------------------------------------------------------
# Full Attention.forward (mask=None, eval-mode dropout)
# ----------------------------------------------------------------------------
@functools.partial(jax.jit, static_argnames=("heads", "compute_dtype",
                                             "tq_cap", "tn_tile_cap"))
def attention_forward(x, w_qkv, b_qkv, w_out, b_out, *, heads,
                      compute_dtype=jnp.bfloat16, tq_cap=256, tn_tile_cap=512):
    """x: (B, N, D); w_qkv: (D, 3D); b_qkv: (3D,); w_out: (D, D); b_out: (D,).

    Weights are in (in_features, out_features) layout (transpose of
    torch.nn.Linear.weight), so y = x @ W + b.  compute_dtype is the MXU operand
    dtype (bf16 default); accumulation/softmax are always f32.  compute_dtype=None
    keeps the input dtype."""
    B, N, D = x.shape
    assert D % heads == 0
    d = D // heads
    assert d % 128 == 0, "TODO(synk): d<128 heads need head-grouping or d-padding"
    scale = float(D) ** -0.5       # module uses dim ** -0.5 (full dim, not per-head)
    out_dtype = x.dtype
    cdt = compute_dtype or x.dtype

    # Pad tokens so attention/linear blocks are (16, 128)-legal (e.g. ViT N=197).
    tq = min(tq_cap, _round_up(N, 16))
    N_pad = _round_up(N, tq)
    if N_pad != N:
        x = jnp.pad(x, ((0, 0), (0, N_pad - N), (0, 0)))

    x2d = x.reshape(B * N_pad, D).astype(cdt)

    # qkv projection; output stays in compute dtype and keeps the fused
    # (qkv, h, d) column layout — no XLA-side rearranges.
    qkv = _linear(x2d, w_qkv.astype(cdt), b_qkv, out_dtype=cdt,
                  tn_cap=tn_tile_cap)
    qkv = qkv.reshape(B, N_pad, 3 * D)                   # free reshape

    o = _flash_attention(qkv, heads=heads, scale=scale, n_real=N,
                         tq=tq, tk=tq, out_dtype=cdt)    # (B, N_pad, D), heads merged

    y = _linear(o.reshape(B * N_pad, D), w_out.astype(cdt), b_out,
                out_dtype=out_dtype, tn_cap=tn_tile_cap)
    y = y.reshape(B, N_pad, D)[:, :N, :]
    # Dropout(p=0.1) is identity at inference time.
    return y


if __name__ == "__main__":
    # Small ViT-like shapes; per-head dim d = 128 keeps fused q/k/v blocks
    # lane-dense; N = 50 exercises the token-padding + key-mask path.
    B, N, D, heads = 2, 50, 256, 2

    key = jax.random.PRNGKey(0)
    kx, kwq, kbq, kwo, kbo = jax.random.split(key, 5)
    x = jax.random.normal(kx, (B, N, D), dtype=jnp.float32)
    w_qkv = jax.random.normal(kwq, (D, 3 * D), dtype=jnp.float32) * (D ** -0.5)
    b_qkv = jax.random.normal(kbq, (3 * D,), dtype=jnp.float32) * 0.02
    w_out = jax.random.normal(kwo, (D, D), dtype=jnp.float32) * (D ** -0.5)
    b_out = jax.random.normal(kbo, (D,), dtype=jnp.float32) * 0.02

    def ref_forward(x, w_qkv, b_qkv, w_out, b_out, heads):
        B, N, D = x.shape
        d = D // heads
        scale = float(D) ** -0.5
        qkv = x.reshape(-1, D) @ w_qkv + b_qkv
        qkv = qkv.reshape(B, N, 3, heads, d)
        q = qkv[:, :, 0].transpose(0, 2, 1, 3)
        k = qkv[:, :, 1].transpose(0, 2, 1, 3)
        v = qkv[:, :, 2].transpose(0, 2, 1, 3)
        dots = jnp.einsum('bhid,bhjd->bhij', q, k) * scale
        attn = jax.nn.softmax(dots, axis=-1)
        o = jnp.einsum('bhij,bhjd->bhid', attn, v)
        o = o.transpose(0, 2, 1, 3).reshape(B * N, D)
        return (o @ w_out + b_out).reshape(B, N, D)

    # 1) f32 compute path: tight correctness check (padding/mask path included).
    out_f32 = attention_forward(x, w_qkv, b_qkv, w_out, b_out,
                                heads=heads, compute_dtype=jnp.float32)
    jax.block_until_ready(out_f32)
    ref = ref_forward(x, w_qkv, b_qkv, w_out, b_out, heads)
    assert out_f32.shape == (B, N, D)
    err32 = float(jnp.max(jnp.abs(out_f32 - ref)))
    assert jnp.allclose(out_f32, ref, atol=5e-3, rtol=5e-3), err32

    # 2) bf16 MXU path (default): compare against an f32 reference evaluated on
    #    the same bf16-rounded inputs; loose tolerance only bounds bf16
    #    quantization of the intermediates (the f32 check above is the gate).
    out_bf = attention_forward(x, w_qkv, b_qkv, w_out, b_out, heads=heads)
    jax.block_until_ready(out_bf)
    ref_bf = ref_forward(x.astype(jnp.bfloat16).astype(jnp.float32),
                         w_qkv.astype(jnp.bfloat16).astype(jnp.float32), b_qkv,
                         w_out.astype(jnp.bfloat16).astype(jnp.float32), b_out,
                         heads)
    errbf = float(jnp.max(jnp.abs(out_bf.astype(jnp.float32) - ref_bf)))
    assert jnp.allclose(out_bf.astype(jnp.float32), ref_bf,
                        atol=8e-2, rtol=5e-2), errbf

    print("KERNEL_OK")
</pallas_src>

<mosaic_0001>
module attributes {stable_mosaic.version = 11 : i64} {
  func.func @_linear_bias_kernel(%arg0: i32, %arg1: i32, %arg2: i32, %arg3: memref<128x256xf32, #tpu.memory_space<vmem>>, %arg4: memref<256x384xf32, #tpu.memory_space<vmem>>, %arg5: memref<1x384xf32, #tpu.memory_space<vmem>>, %arg6: memref<128x384xf32, #tpu.memory_space<vmem>>, %arg7: memref<128x384xf32, #tpu.memory_space<vmem>>) attributes {dimension_semantics = [#tpu.dimension_semantics<parallel>, #tpu.dimension_semantics<parallel>, #tpu.dimension_semantics<arbitrary>], iteration_bounds = array<i64: 1, 2, 1>, scalar_prefetch = 0 : i64, scratch_operands = 1 : i64, tpu.core_type = #tpu.core_type<tc>, window_params = [{transform_indices = @transform_0, window_bounds = array<i64: 128, 256>}, {transform_indices = @transform_1, window_bounds = array<i64: 256, 384>}, {transform_indices = @transform_2, window_bounds = array<i64: 1, 384>}, {transform_indices = @transform_3, window_bounds = array<i64: 128, 384>}]} {
    %c0_i32 = arith.constant 0 : i32
    %0 = arith.cmpi eq, %arg2, %c0_i32 : i32
    %1 = arith.extui %0 : i1 to i32
    %c0_i32_0 = arith.constant 0 : i32
    %2 = arith.cmpi ne, %1, %c0_i32_0 : i32
    scf.if %2 {
      %cst_10 = arith.constant 0.000000e+00 : f32
      %12 = vector.broadcast %cst_10 : f32 to vector<128x384xf32>
      %c0_11 = arith.constant 0 : index
      %c0_12 = arith.constant 0 : index
      %13 = vector.load %arg7[%c0_11, %c0_12] : memref<128x384xf32, #tpu.memory_space<vmem>>, vector<128x384xf32>
      tpu.vector_store %arg7[%c0_11, %c0_12], %12 {strides = array<i32>} : memref<128x384xf32, #tpu.memory_space<vmem>>, vector<128x384xf32>,
    } else {
    }
    %c0 = arith.constant 0 : index
    %c0_1 = arith.constant 0 : index
    %3 = vector.load %arg7[%c0, %c0_1] : memref<128x384xf32, #tpu.memory_space<vmem>>, vector<128x384xf32>
    %c0_2 = arith.constant 0 : index
    %c0_3 = arith.constant 0 : index
    %4 = vector.load %arg3[%c0_2, %c0_3] : memref<128x256xf32, #tpu.memory_space<vmem>>, vector<128x256xf32>
    %c0_4 = arith.constant 0 : index
    %c0_5 = arith.constant 0 : index
    %5 = vector.load %arg4[%c0_4, %c0_5] : memref<256x384xf32, #tpu.memory_space<vmem>>, vector<256x384xf32>
    %cst = arith.constant dense<0.000000e+00> : vector<128x384xf32>
    %6 = tpu.matmul %4, %5, %cst {dimension_numbers = #tpu.dot_dimension_numbers<[1], [0], [0], [1], [0, 0, 1, 1], [], []>} : vector<128x256xf32>, vector<256x384xf32>, vector<128x384xf32> -> vector<128x384xf32>
    %7 = arith.addf %3, %6 : vector<128x384xf32>
    %c0_6 = arith.constant 0 : index
    %c0_7 = arith.constant 0 : index
    %8 = vector.load %arg7[%c0_6, %c0_7] : memref<128x384xf32, #tpu.memory_space<vmem>>, vector<128x384xf32>
    tpu.vector_store %arg7[%c0_6, %c0_7], %7 {strides = array<i32>} : memref<128x384xf32, #tpu.memory_space<vmem>>, vector<128x384xf32>,
    %c0_i32_8 = arith.constant 0 : i32
    %9 = arith.cmpi eq, %arg2, %c0_i32_8 : i32
    %10 = arith.extui %9 : i1 to i32
    %c0_i32_9 = arith.constant 0 : i32
    %11 = arith.cmpi ne, %10, %c0_i32_9 : i32
    scf.if %11 {
      %c0_10 = arith.constant 0 : index
      %c0_11 = arith.constant 0 : index
      %12 = vector.load %arg7[%c0_10, %c0_11] : memref<128x384xf32, #tpu.memory_space<vmem>>, vector<128x384xf32>
      %c0_12 = arith.constant 0 : index
      %c0_13 = arith.constant 0 : index
      %13 = vector.load %arg5[%c0_12, %c0_13] : memref<1x384xf32, #tpu.memory_space<vmem>>, vector<1x384xf32>
      %14 = vector.broadcast %13 : vector<1x384xf32> to vector<128x384xf32>
      %15 = arith.addf %12, %14 : vector<128x384xf32>
      %c0_14 = arith.constant 0 : index
      %c0_15 = arith.constant 0 : index
      %16 = vector.load %arg6[%c0_14, %c0_15] : memref<128x384xf32, #tpu.memory_space<vmem>>, vector<128x384xf32>
      tpu.vector_store %arg6[%c0_14, %c0_15], %15 {strides = array<i32>} : memref<128x384xf32, #tpu.memory_space<vmem>>, vector<128x384xf32>,
    } else {
    }
    return
  }
  func.func @transform_0(%arg0: i32, %arg1: i32, %arg2: i32) -> (i32, i32) {
    %c0_i32 = arith.constant 0 : i32
    return %arg0, %arg2 : i32, i32
  }
  func.func @transform_1(%arg0: i32, %arg1: i32, %arg2: i32) -> (i32, i32) {
    %c0_i32 = arith.constant 0 : i32
    return %arg2, %arg1 : i32, i32
  }
  func.func @transform_2(%arg0: i32, %arg1: i32, %arg2: i32) -> (i32, i32) {
    %c0_i32 = arith.constant 0 : i32
    %c0_i32_0 = arith.constant 0 : i32
    return %c0_i32, %arg1 : i32, i32
  }
  func.func @transform_3(%arg0: i32, %arg1: i32, %arg2: i32) -> (i32, i32) {
    %c0_i32 = arith.constant 0 : i32
    return %arg0, %arg1 : i32, i32
  }
}

module attributes {stable_mosaic.version = 11 : i64} {
  func.func @_linear_bias_kernel(%arg0: i32, %arg1: i32, %arg2: i32, %arg3: memref<128x256xf32, #tpu.memory_space<vmem>>, %arg4: memref<256x256xf32, #tpu.memory_space<vmem>>, %arg5: memref<1x256xf32, #tpu.memory_space<vmem>>, %arg6: memref<128x256xf32, #tpu.memory_space<vmem>>, %arg7: memref<128x256xf32, #tpu.memory_space<vmem>>) attributes {dimension_semantics = [#tpu.dimension_semantics<parallel>, #tpu.dimension_semantics<parallel>, #tpu.dimension_semantics<arbitrary>], iteration_bounds = array<i64: 1, 1, 1>, scalar_prefetch = 0 : i64, scratch_operands = 1 : i64, tpu.core_type = #tpu.core_type<tc>, window_params = [{transform_indices = @transform_0, window_bounds = array<i64: 128, 256>}, {transform_indices = @transform_1, window_bounds = array<i64: 256, 256>}, {transform_indices = @transform_2, window_bounds = array<i64: 1, 256>}, {transform_indices = @transform_3, window_bounds = array<i64: 128, 256>}]} {
    %c0_i32 = arith.constant 0 : i32
    %0 = arith.cmpi eq, %arg2, %c0_i32 : i32
    %1 = arith.extui %0 : i1 to i32
    %c0_i32_0 = arith.constant 0 : i32
    %2 = arith.cmpi ne, %1, %c0_i32_0 : i32
    scf.if %2 {
      %cst_10 = arith.constant 0.000000e+00 : f32
      %12 = vector.broadcast %cst_10 : f32 to vector<128x256xf32>
      %c0_11 = arith.constant 0 : index
      %c0_12 = arith.constant 0 : index
      %13 = vector.load %arg7[%c0_11, %c0_12] : memref<128x256xf32, #tpu.memory_space<vmem>>, vector<128x256xf32>
      tpu.vector_store %arg7[%c0_11, %c0_12], %12 {strides = array<i32>} : memref<128x256xf32, #tpu.memory_space<vmem>>, vector<128x256xf32>,
    } else {
    }
    %c0 = arith.constant 0 : index
    %c0_1 = arith.constant 0 : index
    %3 = vector.load %arg7[%c0, %c0_1] : memref<128x256xf32, #tpu.memory_space<vmem>>, vector<128x256xf32>
    %c0_2 = arith.constant 0 : index
    %c0_3 = arith.constant 0 : index
    %4 = vector.load %arg3[%c0_2, %c0_3] : memref<128x256xf32, #tpu.memory_space<vmem>>, vector<128x256xf32>
    %c0_4 = arith.constant 0 : index
    %c0_5 = arith.constant 0 : index
    %5 = vector.load %arg4[%c0_4, %c0_5] : memref<256x256xf32, #tpu.memory_space<vmem>>, vector<256x256xf32>
    %cst = arith.constant dense<0.000000e+00> : vector<128x256xf32>
    %6 = tpu.matmul %4, %5, %cst {dimension_numbers = #tpu.dot_dimension_numbers<[1], [0], [0], [1], [0, 0, 1, 1], [], []>} : vector<128x256xf32>, vector<256x256xf32>, vector<128x256xf32> -> vector<128x256xf32>
    %7 = arith.addf %3, %6 : vector<128x256xf32>
    %c0_6 = arith.constant 0 : index
    %c0_7 = arith.constant 0 : index
    %8 = vector.load %arg7[%c0_6, %c0_7] : memref<128x256xf32, #tpu.memory_space<vmem>>, vector<128x256xf32>
    tpu.vector_store %arg7[%c0_6, %c0_7], %7 {strides = array<i32>} : memref<128x256xf32, #tpu.memory_space<vmem>>, vector<128x256xf32>,
    %c0_i32_8 = arith.constant 0 : i32
    %9 = arith.cmpi eq, %arg2, %c0_i32_8 : i32
    %10 = arith.extui %9 : i1 to i32
    %c0_i32_9 = arith.constant 0 : i32
    %11 = arith.cmpi ne, %10, %c0_i32_9 : i32
    scf.if %11 {
      %c0_10 = arith.constant 0 : index
      %c0_11 = arith.constant 0 : index
      %12 = vector.load %arg7[%c0_10, %c0_11] : memref<128x256xf32, #tpu.memory_space<vmem>>, vector<128x256xf32>
      %c0_12 = arith.constant 0 : index
      %c0_13 = arith.constant 0 : index
      %13 = vector.load %arg5[%c0_12, %c0_13] : memref<1x256xf32, #tpu.memory_space<vmem>>, vector<1x256xf32>
      %14 = vector.broadcast %13 : vector<1x256xf32> to vector<128x256xf32>
      %15 = arith.addf %12, %14 : vector<128x256xf32>
      %c0_14 = arith.constant 0 : index
      %c0_15 = arith.constant 0 : index
      %16 = vector.load %arg6[%c0_14, %c0_15] : memref<128x256xf32, #tpu.memory_space<vmem>>, vector<128x256xf32>
      tpu.vector_store %arg6[%c0_14, %c0_15], %15 {strides = array<i32>} : memref<128x256xf32, #tpu.memory_space<vmem>>, vector<128x256xf32>,
    } else {
    }
    return
  }
  func.func @transform_0(%arg0: i32, %arg1: i32, %arg2: i32) -> (i32, i32) {
    %c0_i32 = arith.constant 0 : i32
    return %arg0, %arg2 : i32, i32
  }
  func.func @transform_1(%arg0: i32, %arg1: i32, %arg2: i32) -> (i32, i32) {
    %c0_i32 = arith.constant 0 : i32
    return %arg2, %arg1 : i32, i32
  }
  func.func @transform_2(%arg0: i32, %arg1: i32, %arg2: i32) -> (i32, i32) {
    %c0_i32 = arith.constant 0 : i32
    %c0_i32_0 = arith.constant 0 : i32
    return %c0_i32, %arg1 : i32, i32
  }
  func.func @transform_3(%arg0: i32, %arg1: i32, %arg2: i32) -> (i32, i32) {
    %c0_i32 = arith.constant 0 : i32
    return %arg0, %arg1 : i32, i32
  }
}

module attributes {stable_mosaic.version = 11 : i64} {
  func.func @_flash_attn_kernel(%arg0: i32, %arg1: i32, %arg2: i32, %arg3: i32, %arg4: memref<1x64x128xf32, #tpu.memory_space<vmem>>, %arg5: memref<1x64x128xf32, #tpu.memory_space<vmem>>, %arg6: memref<1x64x128xf32, #tpu.memory_space<vmem>>, %arg7: memref<1x64x128xf32, #tpu.memory_space<vmem>>, %arg8: memref<64x1xf32, #tpu.memory_space<vmem>>, %arg9: memref<64x1xf32, #tpu.memory_space<vmem>>, %arg10: memref<64x128xf32, #tpu.memory_space<vmem>>) attributes {dimension_semantics = [#tpu.dimension_semantics<parallel>, #tpu.dimension_semantics<parallel>, #tpu.dimension_semantics<parallel>, #tpu.dimension_semantics<arbitrary>], iteration_bounds = array<i64: 2, 2, 1, 1>, scalar_prefetch = 0 : i64, scratch_operands = 3 : i64, tpu.core_type = #tpu.core_type<tc>, window_params = [{transform_indices = @transform_0, window_bounds = array<i64: 1, 64, 128>}, {transform_indices = @transform_1, window_bounds = array<i64: 1, 64, 128>}, {transform_indices = @transform_2, window_bounds = array<i64: 1, 64, 128>}, {transform_indices = @transform_3, window_bounds = array<i64: 1, 64, 128>}]} {
    %c0_i32 = arith.constant 0 : i32
    %0 = arith.cmpi eq, %arg3, %c0_i32 : i32
    %1 = arith.extui %0 : i1 to i32
    %c0_i32_0 = arith.constant 0 : i32
    %2 = arith.cmpi ne, %1, %c0_i32_0 : i32
    scf.if %2 {
      %cst_28 = arith.constant 0xFF800000 : f32
      %45 = vector.broadcast %cst_28 : f32 to vector<64x1xf32>
      %c0_29 = arith.constant 0 : index
      %c0_30 = arith.constant 0 : index
      %46 = vector.load %arg8[%c0_29, %c0_30] : memref<64x1xf32, #tpu.memory_space<vmem>>, vector<64x1xf32>
      tpu.vector_store %arg8[%c0_29, %c0_30], %45 {strides = array<i32>} : memref<64x1xf32, #tpu.memory_space<vmem>>, vector<64x1xf32>,
      %cst_31 = arith.constant 0.000000e+00 : f32
      %47 = vector.broadcast %cst_31 : f32 to vector<64x1xf32>
      %c0_32 = arith.constant 0 : index
      %c0_33 = arith.constant 0 : index
      %48 = vector.load %arg9[%c0_32, %c0_33] : memref<64x1xf32, #tpu.memory_space<vmem>>, vector<64x1xf32>
      tpu.vector_store %arg9[%c0_32, %c0_33], %47 {strides = array<i32>} : memref<64x1xf32, #tpu.memory_space<vmem>>, vector<64x1xf32>,
      %cst_34 = arith.constant 0.000000e+00 : f32
      %49 = vector.broadcast %cst_34 : f32 to vector<64x128xf32>
      %c0_35 = arith.constant 0 : index
      %c0_36 = arith.constant 0 : index
      %50 = vector.load %arg10[%c0_35, %c0_36] : memref<64x128xf32, #tpu.memory_space<vmem>>, vector<64x128xf32>
      tpu.vector_store %arg10[%c0_35, %c0_36], %49 {strides = array<i32>} : memref<64x128xf32, #tpu.memory_space<vmem>>, vector<64x128xf32>,
    } else {
    }
    %c0 = arith.constant 0 : index
    %c0_1 = arith.constant 0 : index
    %c0_2 = arith.constant 0 : index
    %3 = vector.load %arg4[%c0, %c0_1, %c0_2] : memref<1x64x128xf32, #tpu.memory_space<vmem>>, vector<1x64x128xf32>
    %4 = vector.shape_cast %3 : vector<1x64x128xf32> to vector<64x128xf32>
    %cst = arith.constant 6.250000e-02 : f32
    %5 = vector.broadcast %cst : f32 to vector<64x128xf32>
    %6 = arith.mulf %4, %5 : vector<64x128xf32>
    %c0_3 = arith.constant 0 : index
    %c0_4 = arith.constant 0 : index
    %c0_5 = arith.constant 0 : index
    %7 = vector.load %arg5[%c0_3, %c0_4, %c0_5] : memref<1x64x128xf32, #tpu.memory_space<vmem>>, vector<1x64x128xf32>
    %8 = vector.shape_cast %7 : vector<1x64x128xf32> to vector<64x128xf32>
    %c0_6 = arith.constant 0 : index
    %c0_7 = arith.constant 0 : index
    %c0_8 = arith.constant 0 : index
    %9 = vector.load %arg6[%c0_6, %c0_7, %c0_8] : memref<1x64x128xf32, #tpu.memory_space<vmem>>, vector<1x64x128xf32>
    %10 = vector.shape_cast %9 : vector<1x64x128xf32> to vector<64x128xf32>
    %cst_9 = arith.constant dense<0.000000e+00> : vector<64x64xf32>
    %11 = tpu.matmul %6, %8, %cst_9 {dimension_numbers = #tpu.dot_dimension_numbers<[1], [1], [0], [0], [0, 0, 1, 0], [], []>} : vector<64x128xf32>, vector<64x128xf32>, vector<64x64xf32> -> vector<64x64xf32>
    %c64_i32 = arith.constant 64 : i32
    %12 = arith.muli %arg3, %c64_i32 : i32
    %13 = tpu.iota {dimensions = array<i32: 1>} : vector<64x64xi32>
    %14 = vector.broadcast %12 : i32 to vector<64x64xi32>
    %15 = arith.addi %14, %13 : vector<64x64xi32>
    %c50_i32 = arith.constant 50 : i32
    %16 = vector.broadcast %c50_i32 : i32 to vector<64x64xi32>
    %17 = arith.cmpi slt, %15, %16 : vector<64x64xi32>
    %cst_10 = arith.constant -1.000000e+30 : f32
    %18 = vector.broadcast %cst_10 : f32 to vector<64x64xf32>
    %19 = arith.select %17, %11, %18 : vector<64x64xi1>, vector<64x64xf32>
    %c0_11 = arith.constant 0 : index
    %c0_12 = arith.constant 0 : index
    %20 = vector.load %arg8[%c0_11, %c0_12] : memref<64x1xf32, #tpu.memory_space<vmem>>, vector<64x1xf32>
    %cst_13 = arith.constant dense<0xFF800000> : vector<64xf32>
    %21 = vector.multi_reduction <maximumf>, %19, %cst_13 [1] : vector<64x64xf32> to vector<64xf32>
    %22 = vector.shape_cast %21 : vector<64xf32> to vector<64x1xf32>
    %23 = arith.maximumf %20, %22 : vector<64x1xf32>
    %24 = arith.subf %20, %23 : vector<64x1xf32>
    %25 = math.exp %24 : vector<64x1xf32>
    %26 = vector.broadcast %23 : vector<64x1xf32> to vector<64x64xf32>
    %27 = arith.subf %19, %26 : vector<64x64xf32>
    %28 = math.exp %27 : vector<64x64xf32>
    %c0_14 = arith.constant 0 : index
    %c0_15 = arith.constant 0 : index
    %29 = vector.load %arg9[%c0_14, %c0_15] : memref<64x1xf32, #tpu.memory_space<vmem>>, vector<64x1xf32>
    %30 = arith.mulf %25, %29 : vector<64x1xf32>
    %cst_16 = arith.constant dense<0.000000e+00> : vector<64xf32>
    %31 = vector.multi_reduction <add>, %28, %cst_16 [1] : vector<64x64xf32> to vector<64xf32>
    %32 = vector.shape_cast %31 : vector<64xf32> to vector<64x1xf32>
    %33 = arith.addf %30, %32 : vector<64x1xf32>
    %c0_17 = arith.constant 0 : index
    %c0_18 = arith.constant 0 : index
    %34 = vector.load %arg9[%c0_17, %c0_18] : memref<64x1xf32, #tpu.memory_space<vmem>>, vector<64x1xf32>
    tpu.vector_store %arg9[%c0_17, %c0_18], %33 {strides = array<i32>} : memref<64x1xf32, #tpu.memory_space<vmem>>, vector<64x1xf32>,
    %c0_19 = arith.constant 0 : index
    %c0_20 = arith.constant 0 : index
    %35 = vector.load %arg10[%c0_19, %c0_20] : memref<64x128xf32, #tpu.memory_space<vmem>>, vector<64x128xf32>
    %36 = vector.broadcast %25 : vector<64x1xf32> to vector<64x128xf32>
    %37 = arith.mulf %36, %35 : vector<64x128xf32>
    %cst_21 = arith.constant dense<0.000000e+00> : vector<64x128xf32>
    %38 = tpu.matmul %28, %10, %cst_21 {dimension_numbers = #tpu.dot_dimension_numbers<[1], [0], [0], [1], [0, 0, 1, 1], [], []>} : vector<64x64xf32>, vector<64x128xf32>, vector<64x128xf32> -> vector<64x128xf32>
    %39 = arith.addf %37, %38 : vector<64x128xf32>
    %c0_22 = arith.constant 0 : index
    %c0_23 = arith.constant 0 : index
    %40 = vector.load %arg10[%c0_22, %c0_23] : memref<64x128xf32, #tpu.memory_space<vmem>>, vector<64x128xf32>
    tpu.vector_store %arg10[%c0_22, %c0_23], %39 {strides = array<i32>} : memref<64x128xf32, #tpu.memory_space<vmem>>, vector<64x128xf32>,
    %c0_24 = arith.constant 0 : index
    %c0_25 = arith.constant 0 : index
    %41 = vector.load %arg8[%c0_24, %c0_25] : memref<64x1xf32, #tpu.memory_space<vmem>>, vector<64x1xf32>
    tpu.vector_store %arg8[%c0_24, %c0_25], %23 {strides = array<i32>} : memref<64x1xf32, #tpu.memory_space<vmem>>, vector<64x1xf32>,
    %c0_i32_26 = arith.constant 0 : i32
    %42 = arith.cmpi eq, %arg3, %c0_i32_26 : i32
    %43 = arith.extui %42 : i1 to i32
    %c0_i32_27 = arith.constant 0 : i32
    %44 = arith.cmpi ne, %43, %c0_i32_27 : i32
    scf.if %44 {
      %c0_28 = arith.constant 0 : index
      %c0_29 = arith.constant 0 : index
      %45 = vector.load %arg9[%c0_28, %c0_29] : memref<64x1xf32, #tpu.memory_space<vmem>>, vector<64x1xf32>
      %46 = tpu.reciprocal %45 {approx = true} : vector<64x1xf32> -> vector<64x1xf32>
      %c0_30 = arith.constant 0 : index
      %c0_31 = arith.constant 0 : index
      %47 = vector.load %arg10[%c0_30, %c0_31] : memref<64x128xf32, #tpu.memory_space<vmem>>, vector<64x128xf32>
      %48 = vector.broadcast %46 : vector<64x1xf32> to vector<64x128xf32>
      %49 = arith.mulf %47, %48 : vector<64x128xf32>
      %c0_32 = arith.constant 0 : index
      %c0_33 = arith.constant 0 : index
      %c0_34 = arith.constant 0 : index
      %50 = vector.load %arg7[%c0_32, %c0_33, %c0_34] : memref<1x64x128xf32, #tpu.memory_space<vmem>>, vector<1x64x128xf32>
      %51 = vector.shape_cast %50 : vector<1x64x128xf32> to vector<64x128xf32>
      %52 = vector.shape_cast %49 : vector<64x128xf32> to vector<1x64x128xf32>
      tpu.vector_store %arg7[%c0_32, %c0_33, %c0_34], %52 {strides = array<i32>} : memref<1x64x128xf32, #tpu.memory_space<vmem>>, vector<1x64x128xf32>,
    } else {
    }
    return
  }
  func.func @transform_0(%arg0: i32, %arg1: i32, %arg2: i32, %arg3: i32) -> (i32, i32, i32) {
    %c0_i32 = arith.constant 0 : i32
    return %arg0, %arg2, %arg1 : i32, i32, i32
  }
  func.func @transform_1(%arg0: i32, %arg1: i32, %arg2: i32, %arg3: i32) -> (i32, i32, i32) {
    %c2_i32 = arith.constant 2 : i32
    %0 = arith.addi %c2_i32, %arg1 : i32
    %c0_i32 = arith.constant 0 : i32
    return %arg0, %arg3, %0 : i32, i32, i32
  }
  func.func @transform_2(%arg0: i32, %arg1: i32, %arg2: i32, %arg3: i32) -> (i32, i32, i32) {
    %c4_i32 = arith.constant 4 : i32
    %0 = arith.addi %c4_i32, %arg1 : i32
    %c0_i32 = arith.constant 0 : i32
    return %arg0, %arg3, %0 : i32, i32, i32
  }
  func.func @transform_3(%arg0: i32, %arg1: i32, %arg2: i32, %arg3: i32) -> (i32, i32, i32) {
    %c0_i32 = arith.constant 0 : i32
    return %arg0, %arg2, %arg1 : i32, i32, i32
  }
}

</mosaic_0001>

<bundles_post_ra>
// kernel: attention_forward.4
= control target key start
LH: loop header
LB: loop body
LE: loop exit
PB: predicated region body
PF: predicated region fallthrough
CT: control target
= control target key end

     0   :  { %s2161_s0 = inlined_call_operand.vmem [shape: f32[2,64,768], index: 0, kind: input, shape index: {}, may-alias: {0,1,2}]   ;;  %s2162_s1 = inlined_call_operand.vmem [shape: f32[2,64,768], index: 1, kind: input, shape index: {}, may-alias: {0,1,2}]   ;;  %s2163_s2 = inlined_call_operand.vmem [shape: f32[2,64,768], index: 2, kind: input, shape index: {}, may-alias: {0,1,2}]   ;;  %s2164_s3 = inlined_call_operand.vmem [shape: f32[2,64,256], index: 3, kind: output, shape index: {}]  }
   0x1   :  { %2166 = sst [smem:[#allocation10_spill]] %s2164_s3 }
   0x2   :  { %s1737_s12 = smov 0   ;;  %s1739_s13 = smov 0  }
   0x3   :  { %s1741_s14 = smov 0   ;;  %s1743_s15 = smov 0  }
   0x4   :  { %s1745_s16 = smov 0   ;;  %s1747_s17 = smov 0  }
   0x5   :  { %s1749_s18 = smov 0   ;;  %s1751_s19 = smov 0  }
   0x6   :  { %s1753_s20 = smov 0   ;;  %s1755_s21 = smov 0  }
   0x7   :  { %s1757_s22 = smov 0  }
   0x8 LB: > { %s35_s24 = sadd.s32 1, %s1704_s20  ;;  %s39_s25 = sadd.s32 1, %s1708_s21  ;;  %s1712_s22 = sphi %s1757_s22, %s13_s22   ;;  %s1708_s21 = sphi %s1755_s21, %s2184_s21   ;;  %s1704_s20 = sphi %s1753_s20, %s2183_s20   ;;  %s1700_s19 = sphi %s1751_s19, %s2182_s19   ;;  %s1696_s18 = sphi %s1749_s18, %s2181_s18   ;;  %s1692_s17 = sphi %s1747_s17, %s2180_s17   ;;  %s1688_s16 = sphi %s1745_s16, %s2179_s16   ;;  %s1684_s15 = sphi %s1743_s15, %s2178_s15   ;;  %s1680_s14 = sphi %s1741_s14, %s2177_s14   ;;  %s1676_s13 = sphi %s1739_s13, %s2176_s13   ;;  %s1672_s12 = sphi %s1737_s12, %s2175_s12  }
   0x9   : > { %p37_p0 = scmp.ge.s32.totalorder %s35_s24, 2  ;;  %s50_s26 = sadd.s32 1, %s1692_s17 }
   0xa   : > { %p57_p1 = scmp.ne.s32.totalorder %s1692_s17, %s1688_s16  ;;  %p58_p2 = scmp.eq.s32.totalorder %s1712_s22, 0 }
   0xb   : > { %s2186_s24 = smov (%p37_p0, %s35_s24), 0  ;;  %s2188_s25 = smov (!%p37_p0, %s39_s25), %s1708_s21 }
   0xc   : > { %s46_s27 = ssub.s32 %s1704_s20, %s2186_s24  ;;  %p41_p3 = scmp.ge.s32.totalorder %s2188_s25, 2 }
   0xd   : > { %s73_s28 = sadd.s32 2, %s1704_s20  ;;  %p1810_p4 = por %p58_p2, %p57_p1 }
   0xe   : > { %s74_s30 = sadd.s32 2, %s2186_s24  ;;  %s2190_s25 = smov (%p41_p3, %s2188_s25), 0 }
   0xf   : > { %2168 = sst [smem:[#allocation9_spill]] %s2190_s25  ;;  %s78_s4 = ssub.s32 %s73_s28, %s74_s30 }
  0x10   : > { %s82_s5 = sadd.s32 1, %s1684_s15  ;;  %s43_s6 = ssub.s32 %s1708_s21, %s2190_s25 }
  0x11   : > { %p89_p5 = scmp.ne.s32.totalorder %s1684_s15, %s1680_s14  ;;  %s47_s7 = sor.u32 %s46_s27, %s43_s6 }
  0x12   : > { %s79_s8 = sor.u32 %s78_s4, %s43_s6  ;;  %p48_p6 = scmp.eq.s32.totalorder %s47_s7, 0 }
  0x13   : > { %p80_p7 = scmp.eq.s32.totalorder %s79_s8, 0  ;;  %p1824_p8 = por %p89_p5, %p58_p2 }
  0x14   : > { %s105_s10 = sadd.s32 4, %s1704_s20  ;;  %s106_s30 = sadd.s32 4, %s2186_s24 }
  0x15   : > { %s1830_s11 = scalar_select %p48_p6, %s1692_s17, %s50_s26  }
  0x16   : > { %s1833_s28 = scalar_select %p80_p7, %s1684_s15, %s82_s5  }
  0x17   : > { %s114_s23 = sadd.s32 1, %s1676_s13  ;;  %s110_s25 = ssub.s32 %s105_s10, %s106_s30 }
  0x18   : > { %p121_p9 = scmp.ne.s32.totalorder %s1676_s13, %s1672_s12  ;;  %s111_s27 = sor.u32 %s110_s25, %s43_s6 }
  0x19   : > { %s2170_s3 = sadd.s32 4294967295, %s1712_s22   ;;  %p112_p11 = scmp.eq.s32.totalorder %s111_s27, 0 }
  0x1a   : > { %p155_p10 = scmp.eq.s32.totalorder %s2170_s3, 3  ;;  %p1843_p12 = por %p121_p9, %p58_p2 }
  0x1b   : > { %s1855_s26 = scalar_select %p112_p11, %s1676_s13, %s114_s23  }
  0x1c   : > { %p1850_p13 = por %p155_p10, %p57_p1  ;;  %p1323_p0 = scmp.ge.s32.totalorder %s1712_s22, 4 }
  0x1e   : > { %177 = sbr.rel (%p1323_p0) target bundleno = 70 (0x46), region = 16 }
  0x25   : > { %180 = sbr.rel (!%p1810_p4) target bundleno = 48 (0x30), region = 20  ;;  %s182_s3 = sand.u32 (%p1810_p4), 1, %s1692_s17  }
  0x26   : > { %s1484_s25 = smul.u32 (%p1810_p4), 48, %s1708_s21  ;;  %s1324_s5 = sshll.u32 (%p1810_p4), %s182_s3, 6 }
  0x27   : > { %s184_s23 = scalar_lea.vmem (%p1810_p4), [#allocation5], %s1324_s5 }
  0x28   : > { %s189_s6 = sadd.s32 (%p1810_p4), %s1704_s20, %s1484_s25 }
  0x29   : > { %s1325_s8 = sshll.u32 (%p1810_p4), %s189_s6, 3 }
  0x2a   : > { %s191_s27 = scalar_lea.vmem (%p1810_p4), %s2161_s0, %s1325_s8 }
  0x2b   : > { %v233_v0 = vld [vmem:[%s191_s27] sm:$0xff] (%p1810_p4)  ;;  %v235_v1 = vld [vmem:[%s191_s27 + $0x30] sm:$0xff] (%p1810_p4) }
  0x2c   : > { %v237_v2 = vld [vmem:[%s191_s27 + $0x60] sm:$0xff]  ;;  %234 = vst [vmem:[%s184_s23] sm:$0xff] %v233_v0  ;;  %236 = vst [vmem:[%s184_s23 + $0x8] sm:$0xff] %v235_v1  ;;  %v239_v3 = vld [vmem:[%s191_s27 + $0x90] sm:$0xff] }
  0x2d   : > { %238 = vst [vmem:[%s184_s23 + $0x10] sm:$0xff] %v237_v2  ;;  %v241_v4 = vld [vmem:[%s191_s27 + $0xc0] sm:$0xff]  ;;  %v243_v5 = vld [vmem:[%s191_s27 + $0xf0] sm:$0xff]  ;;  %240 = vst [vmem:[%s184_s23 + $0x18] sm:$0xff] %v239_v3 }
  0x2e   : > { %242 = vst [vmem:[%s184_s23 + $0x20] sm:$0xff] %v241_v4  ;;  %244 = vst [vmem:[%s184_s23 + $0x28] sm:$0xff] %v243_v5  ;;  %v245_v6 = vld [vmem:[%s191_s27 + $0x120] sm:$0xff]  ;;  %v247_v7 = vld [vmem:[%s191_s27 + $0x150] sm:$0xff] }
  0x2f   : > { %246 = vst [vmem:[%s184_s23 + $0x30] sm:$0xff] %v245_v6  ;;  %248 = vst [vmem:[%s184_s23 + $0x38] sm:$0xff] %v247_v7 }
  0x30 PF: > { %254 = sbr.rel (!%p1824_p8) target bundleno = 59 (0x3b), region = 58  ;;  %s256_s29 = sand.u32 (%p1824_p8), 1, %s1684_s15  }
  0x31   : > { %s1216_s3 = smul.u32 (%p1824_p8), 48, %s1708_s21  ;;  %s1326_s25 = sshll.u32 (%p1824_p8), %s256_s29, 6 }
  0x32   : > { %s258_s27 = scalar_lea.vmem (%p1824_p8), [#allocation6], %s1326_s25 }
  0x33   : > { %s1217_s5 = sadd.s32 (%p1824_p8), %s1704_s20, %s1216_s3 }
  0x34   : > { %s1327_s6 = sshll.u32 (%p1824_p8), %s1217_s5, 3 }
  0x35   : > { %s1219_s30 = scalar_lea.vmem (%p1824_p8), %s2162_s1, %s1327_s6 }
  0x36   : > { %v1328_v8 = vld [vmem:[%s1219_s30 + $0x10] sm:$0xff] (%p1824_p8)  ;;  %v1329_v9 = vld [vmem:[%s1219_s30 + $0x40] sm:$0xff] (%p1824_p8) }
  0x37   : > { %v1330_v10 = vld [vmem:[%s1219_s30 + $0x70] sm:$0xff]  ;;  %309 = vst [vmem:[%s258_s27] sm:$0xff] %v1328_v8  ;;  %311 = vst [vmem:[%s258_s27 + $0x8] sm:$0xff] %v1329_v9  ;;  %v1331_v11 = vld [vmem:[%s1219_s30 + $0xa0] sm:$0xff] }
  0x38   : > { %313 = vst [vmem:[%s258_s27 + $0x10] sm:$0xff] %v1330_v10  ;;  %v1332_v12 = vld [vmem:[%s1219_s30 + $0xd0] sm:$0xff]  ;;  %v1333_v13 = vld [vmem:[%s1219_s30 + $0x100] sm:$0xff]  ;;  %315 = vst [vmem:[%s258_s27 + $0x18] sm:$0xff] %v1331_v11 }
  0x39   : > { %317 = vst [vmem:[%s258_s27 + $0x20] sm:$0xff] %v1332_v12  ;;  %319 = vst [vmem:[%s258_s27 + $0x28] sm:$0xff] %v1333_v13  ;;  %v1334_v14 = vld [vmem:[%s1219_s30 + $0x130] sm:$0xff]  ;;  %v1335_v15 = vld [vmem:[%s1219_s30 + $0x160] sm:$0xff] }
  0x3a   : > { %321 = vst [vmem:[%s258_s27 + $0x30] sm:$0xff] %v1334_v14  ;;  %323 = vst [vmem:[%s258_s27 + $0x38] sm:$0xff] %v1335_v15 }
  0x3b PF: > { %329 = sbr.rel (!%p1843_p12) target bundleno = 70 (0x46), region = 96  ;;  %s331_s9 = sand.u32 (%p1843_p12), 1, %s1676_s13  }
  0x3c   : > { %s1225_s23 = smul.u32 (%p1843_p12), 48, %s1708_s21  ;;  %s1336_s29 = sshll.u32 (%p1843_p12), %s331_s9, 6 }
  0x3d   : > { %s333_s10 = scalar_lea.vmem (%p1843_p12), [#allocation7], %s1336_s29 }
  0x3e   : > { %s1226_s3 = sadd.s32 (%p1843_p12), %s1704_s20, %s1225_s23 }
  0x3f   : > { %s1337_s25 = sshll.u32 (%p1843_p12), %s1226_s3, 3 }
  0x40   : > { %s1228_s8 = scalar_lea.vmem (%p1843_p12), %s2163_s2, %s1337_s25 }
  0x41   : > { %v1338_v16 = vld [vmem:[%s1228_s8 + $0x20] sm:$0xff] (%p1843_p12)  ;;  %v1339_v17 = vld [vmem:[%s1228_s8 + $0x50] sm:$0xff] (%p1843_p12) }
  0x42   : > { %v1340_v18 = vld [vmem:[%s1228_s8 + $0x80] sm:$0xff]  ;;  %384 = vst [vmem:[%s333_s10] sm:$0xff] %v1338_v16  ;;  %386 = vst [vmem:[%s333_s10 + $0x8] sm:$0xff] %v1339_v17  ;;  %v1341_v19 = vld [vmem:[%s1228_s8 + $0xb0] sm:$0xff] }
  0x43   : > { %388 = vst [vmem:[%s333_s10 + $0x10] sm:$0xff] %v1340_v18  ;;  %v1342_v20 = vld [vmem:[%s1228_s8 + $0xe0] sm:$0xff]  ;;  %v1343_v21 = vld [vmem:[%s1228_s8 + $0x110] sm:$0xff]  ;;  %390 = vst [vmem:[%s333_s10 + $0x18] sm:$0xff] %v1341_v19 }
  0x44   : > { %392 = vst [vmem:[%s333_s10 + $0x20] sm:$0xff] %v1342_v20  ;;  %394 = vst [vmem:[%s333_s10 + $0x28] sm:$0xff] %v1343_v21  ;;  %v1344_v22 = vld [vmem:[%s1228_s8 + $0x140] sm:$0xff]  ;;  %v1345_v23 = vld [vmem:[%s1228_s8 + $0x170] sm:$0xff] }
  0x45   : > { %396 = vst [vmem:[%s333_s10 + $0x30] sm:$0xff] %v1344_v22  ;;  %398 = vst [vmem:[%s333_s10 + $0x38] sm:$0xff] %v1345_v23 }
  0x46 PF: > { %p1346_p1 = scmp.ge.s32.totalorder %s1712_s22, 1  ;;  %p403_p2 = scmp.lt.s32.totalorder %s1712_s22, 5 }
  0x48   : > { %p404_p3 = pnand %p1346_p1, %p403_p2 }
  0x49   : > { %s417_s4 = sand.u32 (!%p404_p3), 1, %s1680_s14   ;;  %s410_s30 = sand.u32 (!%p404_p3), 1, %s1688_s16   ;;  %vm464_vm0 = vcmask (!%p404_p3), 7168   ;;  %v1714_v52 = vmov (!%p404_p3), -inf   ;;  %v627_v53 = vlaneseq (!%p404_p3)  ;;  %vm648_vm2 = vcmask (!%p404_p3), 523264  }
  0x4a   : > { %407 = sbr.rel (%p404_p3) target bundleno = 944 (0x3b0), region = 134  ;;  %s1348_s27 = sshll.u32 (!%p404_p3), %s417_s4, 6  ;;  %465 = vst.msk [vmem:[#allocation2] sm:$0xff] (!%p404_p3), %vm464_vm0, %v1714_v52  ;;  %466 = vst.msk [vmem:[#allocation2 + $0x8] sm:$0xff] (!%p404_p3), %vm464_vm0, %v1714_v52  ;;  %v1715_v15 = vmov (!%p404_p3), 0   ;;  %v1716_v16 = vmov (!%p404_p3), 0.0  }
  0x4b   : > { %s1886_s9 = sshll.u32 (!%p404_p3), %s410_s30, 6  ;;  %s419_s23 = scalar_lea.vmem (!%p404_p3), [#allocation6], %s1348_s27  ;;  %467 = vst.msk [vmem:[#allocation2 + $0x10] sm:$0xff] (!%p404_p3), %vm464_vm0, %v1714_v52  ;;  %468 = vst.msk [vmem:[#allocation2 + $0x18] sm:$0xff] (!%p404_p3), %vm464_vm0, %v1714_v52  ;;  %v628_v54 = vand.u32 (!%p404_p3), 127, %v627_v53  ;;  %1576 = vset.pattern.permute.xlu0 (!%p404_p3), %v1715_v15  ;;  %1577 = vset.pattern.permute.xlu1 (!%p404_p3), %v1715_v15 }
  0x4c   : > { %v505_v24 = vld [vmem:[%s419_s23] sm:$0xff] (!%p404_p3)  ;;  %v506_v25 = vld [vmem:[%s419_s23 + $0x8] sm:$0xff] (!%p404_p3)  ;;  %v507_v26 = vld [vmem:[%s419_s23 + $0x10] sm:$0xff] (!%p404_p3)  ;;  %s1889_s29 = scalar_lea.vmem (!%p404_p3), [#allocation5], %s1886_s9  ;;  %469 = vst.msk [vmem:[#allocation2 + $0x20] sm:$0xff] (!%p404_p3), %vm464_vm0, %v1714_v52  ;;  %s424_s14 = sand.u32 (!%p404_p3), 1, %s1672_s12  }
  0x4d   : > { %v1452_v27 = vpack.c.bf16 (!%p404_p3), %v506_v25, %v505_v24  ;;  %v508_v28 = vld [vmem:[%s419_s23 + $0x18] sm:$0xff] (!%p404_p3)  ;;  %v489_v30 = vld [vmem:[%s1889_s29] sm:$0xff] (!%p404_p3)  ;;  %v510_v33 = vld [vmem:[%s419_s23 + $0x28] sm:$0xff] (!%p404_p3)  ;;  %470 = vst.msk [vmem:[#allocation2 + $0x28] sm:$0xff] (!%p404_p3), %vm464_vm0, %v1714_v52  ;;  %vm631_vm1 = vcmp.lt.s32.totalorder (!%p404_p3), %v628_v54, 50  ;;  %s1349_s16 = sshll.u32 (!%p404_p3), %s424_s14, 6 }
  0x4e   : > { %v1456_v29 = vpack.c.bf16 (!%p404_p3), %v508_v28, %v507_v26  ;;  %v497_v31 = vmul.f32 (!%p404_p3), 0.0625, %v489_v30  ;;  %v509_v32 = vld [vmem:[%s419_s23 + $0x20] sm:$0xff] (!%p404_p3)  ;;  %v511_v35 = vld [vmem:[%s419_s23 + $0x30] sm:$0xff] (!%p404_p3)  ;;  %v512_v36 = vld [vmem:[%s419_s23 + $0x38] sm:$0xff] (!%p404_p3)  ;;  %471 = vst.msk [vmem:[#allocation2 + $0x30] sm:$0xff] (!%p404_p3), %vm464_vm0, %v1714_v52  ;;  %s1970_s3 = scalar_lea.vmem (!%p404_p3), [#allocation7], %s1349_s16 }
  0x4f   : > { %1453 = vmatprep.subr.bf16.mxu0 (!%p404_p3), %v1452_v27  ;;  %v1460_v34 = vpack.c.bf16 (!%p404_p3), %v510_v33, %v509_v32  ;;  %v1464_v37 = vpack.c.bf16 (!%p404_p3), %v512_v36, %v511_v35  ;;  %v490_v38 = vld [vmem:[%s1889_s29 + $0x8] sm:$0xff] (!%p404_p3)  ;;  %v491_v39 = vld [vmem:[%s1889_s29 + $0x10] sm:$0xff] (!%p404_p3)  ;;  %v492_v42 = vld [vmem:[%s1889_s29 + $0x18] sm:$0xff] (!%p404_p3)  ;;  %472 = vst.msk [vmem:[#allocation2 + $0x38] sm:$0xff] (!%p404_p3), %vm464_vm0, %v1714_v52  ;;  %s2103_s12 = scalar_lea.vmem (!%p404_p3), [#allocation8], %s1886_s9 }
  0x50   : > { %1455 = vmatpush3.bf16.xpose.msra.mxu0 (!%p404_p3), %v1452_v27  ;;  %1412 = vmatprep.mubr.f32.mxu0 (!%p404_p3), %v497_v31  ;;  %v498_v40 = vmul.f32 (!%p404_p3), 0.0625, %v490_v38  ;;  %v499_v41 = vmul.f32 (!%p404_p3), 0.0625, %v491_v39  ;;  %v493_v43 = vld [vmem:[%s1889_s29 + $0x20] sm:$0xff] (!%p404_p3)  ;;  %v500_v44 = vmul.f32 (!%p404_p3), 0.0625, %v492_v42  ;;  %v494_v46 = vld [vmem:[%s1889_s29 + $0x28] sm:$0xff] (!%p404_p3)  ;;  %v495_v47 = vld [vmem:[%s1889_s29 + $0x30] sm:$0xff] (!%p404_p3) }
  0x51   : > { %1457 = vmatprep.subr.bf16.mxu0 %v1456_v29  ;;  %v501_v45 = vmul.f32 0.0625, %v493_v43  ;;  %v502_v48 = vmul.f32 0.0625, %v494_v46  ;;  %v503_v49 = vmul.f32 0.0625, %v495_v47  ;;  %v496_v50 = vld [vmem:[%s1889_s29 + $0x38] sm:$0xff]  ;;  %473 = vst.msk [vmem:[#allocation3] sm:$0xff] %vm464_vm0, %v1716_v16  ;;  %474 = vst.msk [vmem:[#allocation3 + $0x8] sm:$0xff] %vm464_vm0, %v1716_v16 }
  0x52   : > { %v504_v51 = vmul.f32 0.0625, %v496_v50  ;;  %475 = vst.msk [vmem:[#allocation3 + $0x10] sm:$0xff] %vm464_vm0, %v1716_v16  ;;  %476 = vst.msk [vmem:[#allocation3 + $0x18] sm:$0xff] %vm464_vm0, %v1716_v16  ;;  %v1955_v17 = vld [vmem:[#allocation2] sm:$0xff]  ;;  %v1961_v20 = vld [vmem:[#allocation2 + $0x8] sm:$0xff]  ;;  %s1360_s25 = sshll.u32 (%p1850_p13), %s1700_s19, 4 }
  0x53   : > { %477 = vst.msk [vmem:[#allocation3 + $0x20] sm:$0xff] %vm464_vm0, %v1716_v16  ;;  %478 = vst.msk [vmem:[#allocation3 + $0x28] sm:$0xff] %vm464_vm0, %v1716_v16  ;;  %v1963_v21 = vld [vmem:[#allocation2 + $0x10] sm:$0xff]  ;;  %v513_v25 = vld [vmem:[%s1970_s3] sm:$0xff]  ;;  %s1129_s5 = sadd.s32 (%p1850_p13), %s1696_s18, %s1360_s25  ;;  %s2173_s10 = sld [smem:[#allocation10_spill]] (%p1850_p13) }
  0x54   : > { %479 = vst.msk [vmem:[#allocation3 + $0x30] sm:$0xff] %vm464_vm0, %v1716_v16  ;;  %480 = vst.msk [vmem:[#allocation3 + $0x38] sm:$0xff] %vm464_vm0, %v1716_v16  ;;  %v514_v26 = vld [vmem:[%s1970_s3 + $0x8] sm:$0xff]  ;;  %v1980_v30 = vld [vmem:[#allocation2 + $0x18] sm:$0xff]  ;;  %s1361_s7 = sshll.u32 (%p1850_p13), %s1129_s5, 3 }
  0x55   : > { %v1982_v31 = vld [vmem:[#allocation2 + $0x20] sm:$0xff]  ;;  %v515_v36 = vld [vmem:[%s1970_s3 + $0x10] sm:$0xff] }
  0x56   : > { %v517_v47 = vld [vmem:[%s1970_s3 + $0x20] sm:$0xff] }
  0x58   : > { %1459 = vmatpush3.bf16.xpose.msra.mxu0 %v1456_v29  ;;  %v1468_v29 = vpack.c.bf16 %v514_v26, %v513_v25 }
  0x59   : > { %1461 = vmatprep.subr.bf16.mxu0 %v1460_v34  ;;  %s1131_s4 = scalar_lea.vmem (%p1850_p13), %s2173_s10, %s1361_s7 }
  0x5a   : > { %1469 = vmatprep.subr.bf16.mxu1 %v1468_v29 }
  0x5b   : > { %1471 = vmatpush3.bf16.msra.mxu1 %v1468_v29 }
  0x60   : > { %1463 = vmatpush3.bf16.xpose.msra.mxu0 %v1460_v34 }
  0x61   : > { %1465 = vmatprep.subr.bf16.mxu0 %v1464_v37 }
  0x68   : > { %1467 = vmatpush3.bf16.xpose.msra.mxu0 %v1464_v37  ;;  %v516_v37 = vld [vmem:[%s1970_s3 + $0x18] sm:$0xff] }
  0x69   : > { %v1472_v42 = vpack.c.bf16 %v516_v37, %v515_v36 }
  0x6b   : > { %1473 = vmatprep.subr.bf16.mxu1 %v1472_v42 }
  0x6c   : > { %1475 = vmatpush3.bf16.msra.mxu1 %v1472_v42 }
  0x6f   : > { %1413 = vmatmul.mubr.f32.vlgmr.msra.gmra.mrb[0].mxu0 %v498_v40  ;;  %v2001_v40 = vld [vmem:[#allocation2 + $0x28] sm:$0xff] }
  0x70   : > { %1415 = vmatprep.mubr.f32.mxu0 %v499_v41  ;;  %v2003_v41 = vld [vmem:[#allocation2 + $0x30] sm:$0xff] }
  0x73   : > { %1416 = vmatmul.mubr.f32.gmra.mrb[2].mxu0 %v500_v44 }
  0x74   : > { %1418 = vmatprep.mubr.f32.mxu0 %v501_v45 }
  0x77   : > { %1419 = vmatmul.mubr.f32.gmra.mrb[4].mxu0 %v502_v48  ;;  %v518_v48 = vld [vmem:[%s1970_s3 + $0x28] sm:$0xff] }
  0x78   : > { %1421 = vmatprep.mubr.f32.mxu0 %v503_v49  ;;  %v1476_v52 = vpack.c.bf16 %v518_v48, %v517_v47 }
  0x7a   : > { %1477 = vmatprep.subr.bf16.mxu1 %v1476_v52 }
  0x7b   : > { %1422 = vmatmul.mubr.f32.gmra.mrb[6].mxu0 %v504_v51  ;;  %v2022_v51 = vld [vmem:[#allocation2 + $0x38] sm:$0xff]  ;;  %1479 = vmatpush3.bf16.msra.mxu1 %v1476_v52 }
 0x142   : > { %v1414_v55 = vpop.f32.mrb[0].mxu0 }
 0x143   : > { %v587_v56 = vpop.f32.mrb[1].mxu0  ;;  %v1913_v59 = vsel %vm631_vm1, %v1414_v55, -1e+30 }
 0x144   : > { %v1908_v57 = vsel %vm631_vm1, %v587_v56, -1e+30  ;;  %v652_v63 = vsel %vm648_vm2, %v1913_v59, -inf  ;;  %v519_v56 = vld [vmem:[%s1970_s3 + $0x30] sm:$0xff] }
 0x145   : > { %v649_v58 = vsel %vm648_vm2, %v1908_v57, -inf }
 0x146   : > { %650 = vmax.xlane.f32.xlu0 %v649_v58  ;;  %v1417_v60 = vpop.f32.mrb[2].mxu0  ;;  %v520_v58 = vld [vmem:[%s1970_s3 + $0x38] sm:$0xff] }
 0x147   : > { %v597_v61 = vpop.f32.mrb[3].mxu0  ;;  %v1923_v1 = vsel %vm631_vm1, %v1417_v60, -1e+30 }
 0x148   : > { %v1916_v62 = vsel %vm631_vm1, %v597_v61, -1e+30  ;;  %v658_v6 = vsel %vm648_vm2, %v1923_v1, -inf  ;;  %v1480_v61 = vpack.c.bf16 %v520_v58, %v519_v56 }
 0x149   : > { %v655_v0 = vsel %vm648_vm2, %v1916_v62, -inf }
 0x14a   : > { %653 = vmax.xlane.f32.xlu0 %v652_v63  ;;  %656 = vmax.xlane.f32.xlu1 %v655_v0  ;;  %v1420_v2 = vpop.f32.mrb[4].mxu0 }
 0x14b   : > { %v607_v3 = vpop.f32.mrb[5].mxu0  ;;  %v1926_v4 = vsel %vm631_vm1, %v1420_v2, -1e+30  ;;  %1481 = vmatprep.subr.bf16.mxu1 %v1480_v61 }
 0x14c   : > { %v1929_v5 = vsel %vm631_vm1, %v607_v3, -1e+30  ;;  %v664_v9 = vsel %vm648_vm2, %v1926_v4, -inf  ;;  %1483 = vmatpush3.bf16.msra.mxu1 %v1480_v61 }
 0x14d   : > { %v661_v7 = vsel %vm648_vm2, %v1929_v5, -inf }
 0x14e   : > { %659 = vmax.xlane.f32.xlu1 %v658_v6  ;;  %662 = vmax.xlane.f32.xlu0 %v661_v7  ;;  %v1423_v8 = vpop.f32.mrb[6].mxu0 }
 0x14f   : > { %v617_v10 = vpop.f32.mrb[7].mxu0  ;;  %v1938_v11 = vsel %vm631_vm1, %v1423_v8, -1e+30 }
 0x150   : > { %v1941_v12 = vsel %vm631_vm1, %v617_v10, -1e+30  ;;  %v670_v14 = vsel %vm648_vm2, %v1938_v11, -inf }
 0x151   : > { %v667_v13 = vsel %vm648_vm2, %v1941_v12, -inf }
 0x152   : > { %665 = vmax.xlane.f32.xlu1 %v664_v9  ;;  %668 = vmax.xlane.f32.xlu0 %v667_v13 }
 0x156   : > { %671 = vmax.xlane.f32.xlu1 %v670_v14 }
 0x1d3   : > { %v651_v18 = vpop.xlane.xlu0 %650 }
 0x1d4   : > { %v1958_v19 = vmax.f32 %v1955_v17, %v651_v18 }
 0x1d6   : > { %v681_v22 = vsub.f32 %v1955_v17, %v1958_v19  ;;  %1027 = vst.msk [vmem:[#allocation2] sm:$0xff] %vm464_vm0, %v1958_v19  ;;  %707 = vperm.xlu0 %1576, %v1958_v19  }
 0x1d7   : > { %v654_v23 = vpop.xlane.xlu0 %653  ;;  %v657_v24 = vpop.xlane.xlu1 %656 }
 0x1d8   : > { %v1975_v27 = vmax.f32 %v1961_v20, %v654_v23  ;;  %v1978_v28 = vmax.f32 %v1963_v21, %v657_v24 }
 0x1da   : > { %v682_v32 = vsub.f32 %v1961_v20, %v1975_v27  ;;  %1028 = vst.msk [vmem:[#allocation2 + $0x8] sm:$0xff] %vm464_vm0, %v1975_v27  ;;  %v683_v33 = vsub.f32 %v1963_v21, %v1978_v28  ;;  %1029 = vst.msk [vmem:[#allocation2 + $0x10] sm:$0xff] %vm464_vm0, %v1978_v28  ;;  %712 = vperm.xlu1 %1577, %v1975_v27  }
 0x1db   : > { %v660_v34 = vpop.xlane.xlu1 %659  ;;  %v663_v35 = vpop.xlane.xlu0 %662 }
 0x1dc   : > { %v1996_v38 = vmax.f32 %v1980_v30, %v660_v34  ;;  %v1999_v39 = vmax.f32 %v1982_v31, %v663_v35 }
 0x1de   : > { %v684_v43 = vsub.f32 %v1980_v30, %v1996_v38  ;;  %1030 = vst.msk [vmem:[#allocation2 + $0x18] sm:$0xff] %vm464_vm0, %v1996_v38  ;;  %722 = vperm.xlu1 %1577, %v1996_v38   ;;  %v685_v44 = vsub.f32 %v1982_v31, %v1999_v39  ;;  %1031 = vst.msk [vmem:[#allocation2 + $0x20] sm:$0xff] %vm464_vm0, %v1999_v39 }
 0x1df   : > { %v666_v45 = vpop.xlane.xlu1 %665  ;;  %v669_v46 = vpop.xlane.xlu0 %668 }
 0x1e0   : > { %v2017_v49 = vmax.f32 %v2001_v40, %v666_v45  ;;  %v2020_v50 = vmax.f32 %v2003_v41, %v669_v46  ;;  %v697_v20 = vmul.f32 1.442695, %v685_v44 }
 0x1e2   : > { %717 = vperm.xlu1 %1577, %v1978_v28   ;;  %v686_v53 = vsub.f32 %v2001_v40, %v2017_v49  ;;  %1032 = vst.msk [vmem:[#allocation2 + $0x28] sm:$0xff] %vm464_vm0, %v2017_v49  ;;  %v687_v54 = vsub.f32 %v2003_v41, %v2020_v50  ;;  %1033 = vst.msk [vmem:[#allocation2 + $0x30] sm:$0xff] %vm464_vm0, %v2020_v50 }
 0x1e3   : > { %v672_v55 = vpop.xlane.xlu1 %671 }
 0x1e4   : > { %v2036_v60 = vmax.f32 %v2022_v51, %v672_v55  ;;  %v699_v17 = vmul.f32 1.442695, %v686_v53  ;;  %v701_v19 = vmul.f32 1.442695, %v687_v54 }
 0x1e6   : > { %732 = vperm.xlu1 %1577, %v2017_v49   ;;  %v688_v63 = vsub.f32 %v2022_v51, %v2036_v60  ;;  %1034 = vst.msk [vmem:[#allocation2 + $0x38] sm:$0xff] %vm464_vm0, %v2036_v60  ;;  %v772_v51 = vld [vmem:[#allocation3 + $0x18] sm:$0xff] }
 0x1e8   : > { %v703_v21 = vmul.f32 1.442695, %v688_v63  ;;  %v771_v63 = vld [vmem:[#allocation3 + $0x10] sm:$0xff] }
 0x1ea   : > { %727 = vperm.xlu1 %1577, %v1999_v39   ;;  %v769_v39 = vld [vmem:[#allocation3] sm:$0xff] }
 0x1ee   : > { %737 = vperm.xlu1 %1577, %v2020_v50  }
 0x1f2   : > { %742 = vperm.xlu1 %1577, %v2036_v60  }
 0x255   : > { %v708_v0 = vpop.permute.xlu0 %707 }
 0x256   : > { %v745_v2 = vsub.f32 %v1908_v57, %v708_v0  ;;  %v691_v0 = vmul.f32 1.442695, %v682_v32 }
 0x258   : > { %v753_v3 = vmul.f32 1.442695, %v745_v2  ;;  %v689_v2 = vmul.f32 1.442695, %v681_v22 }
 0x259   : > { %v713_v6 = vpop.permute.xlu1 %712 }
 0x25a   : > { %1578 = vpow2.f32 %v753_v3  ;;  %v746_v7 = vsub.f32 %v1913_v59, %v713_v6  ;;  %v693_v3 = vmul.f32 1.442695, %v683_v33  ;;  %v695_v6 = vmul.f32 1.442695, %v684_v43  ;;  %v770_v43 = vld [vmem:[#allocation3 + $0x8] sm:$0xff] }
 0x25c   : > { %v755_v8 = vmul.f32 1.442695, %v746_v7 }
 0x25d   : > { %v723_v9 = vpop.permute.xlu1 %722 }
 0x25e   : > { %1580 = vpow2.f32 %v755_v8  ;;  %v748_v10 = vsub.f32 %v1923_v1, %v723_v9 }
 0x260   : > { %v759_v13 = vmul.f32 1.442695, %v748_v10 }
 0x261   : > { %v718_v14 = vpop.permute.xlu1 %717 }
 0x262   : > { %1582 = vpow2.f32 %v759_v13  ;;  %v747_v15 = vsub.f32 %v1916_v62, %v718_v14  ;;  %v774_v13 = vld [vmem:[#allocation3 + $0x28] sm:$0xff] }
 0x264   : > { %v1579_v16 = vpop.eup %1578  ;;  %v757_v18 = vmul.f32 1.442695, %v747_v15 }
 0x265   : > { %v733_v23 = vpop.permute.xlu1 %732  ;;  %1440 = vmatprep.mubr.msk.f32.mxu1 %vm648_vm2, %v1579_v16  ;;  %v785_v57 = vsel %vm648_vm2, %v1579_v16, 0.0 }
 0x266   : > { %1584 = vpow2.f32 %v757_v18  ;;  %v750_v59 = vsub.f32 %v1926_v4, %v733_v23  ;;  %786 = vadd.xlane.f32.xlu1 %v785_v57  ;;  %v773_v23 = vld [vmem:[#allocation3 + $0x20] sm:$0xff] }
 0x268   : > { %v1581_v24 = vpop.eup %1580  ;;  %v763_v25 = vmul.f32 1.442695, %v750_v59 }
 0x269   : > { %v728_v26 = vpop.permute.xlu1 %727  ;;  %1441 = vmatmul.mubr.msk.f32.vlgmr.msra.gmra.mrb[0].mxu1 %vm648_vm2, %v1581_v24  ;;  %v788_v1 = vsel %vm648_vm2, %v1581_v24, 0.0 }
 0x26a   : > { %1586 = vpow2.f32 %v763_v25  ;;  %v749_v62 = vsub.f32 %v1929_v5, %v728_v26  ;;  %789 = vadd.xlane.f32.xlu0 %v788_v1  ;;  %v775_v26 = vld [vmem:[#allocation3 + $0x30] sm:$0xff] }
 0x26c   : > { %v1583_v29 = vpop.eup %1582  ;;  %v761_v34 = vmul.f32 1.442695, %v749_v62 }
 0x26d   : > { %v738_v35 = vpop.permute.xlu1 %737  ;;  %v794_v36 = vsel %vm648_vm2, %v1583_v29, 0.0 }
 0x26e   : > { %1588 = vpow2.f32 %v761_v34  ;;  %v751_v4 = vsub.f32 %v1941_v12, %v738_v35  ;;  %795 = vadd.xlane.f32.xlu1 %v794_v36  ;;  %v776_v36 = vld [vmem:[#allocation3 + $0x38] sm:$0xff] }
 0x270   : > { %v1585_v37 = vpop.eup %1584  ;;  %v765_v42 = vmul.f32 1.442695, %v751_v4 }
 0x271   : > { %v743_v45 = vpop.permute.xlu1 %742  ;;  %1443 = vmatprep.mubr.msk.f32.mxu1 %vm648_vm2, %v1585_v37  ;;  %v791_v46 = vsel %vm648_vm2, %v1585_v37, 0.0 }
 0x272   : > { %1590 = vpow2.f32 %v765_v42  ;;  %v752_v5 = vsub.f32 %v1938_v11, %v743_v45  ;;  %792 = vadd.xlane.f32.xlu0 %v791_v46  ;;  %1444 = vmatmul.mubr.msk.f32.gmra.mrb[2].mxu1 %vm648_vm2, %v1583_v29 }
 0x274   : > { %v1587_v47 = vpop.eup %1586  ;;  %v767_v48 = vmul.f32 1.442695, %v752_v5 }
 0x275   : > { %v800_v52 = vsel %vm648_vm2, %v1587_v47, 0.0 }
 0x276   : > { %1592 = vpow2.f32 %v767_v48  ;;  %801 = vadd.xlane.f32.xlu1 %v800_v52 }
 0x277   : > { %1594 = vpow2.f32 %v691_v0 }
 0x278   : > { %v1589_v12 = vpop.eup %1588  ;;  %1596 = vpow2.f32 %v689_v2 }
 0x279   : > { %1446 = vmatprep.mubr.msk.f32.mxu1 %vm648_vm2, %v1589_v12  ;;  %v797_v55 = vsel %vm648_vm2, %v1589_v12, 0.0  ;;  %1598 = vpow2.f32 %v693_v3 }
 0x27a   : > { %798 = vadd.xlane.f32.xlu0 %v797_v55  ;;  %1447 = vmatmul.mubr.msk.f32.gmra.mrb[4].mxu1 %vm648_vm2, %v1587_v47  ;;  %1600 = vpow2.f32 %v695_v6 }
 0x27b   : > { %1602 = vpow2.f32 %v697_v20 }
 0x27c   : > { %v1591_v56 = vpop.eup %1590  ;;  %1604 = vpow2.f32 %v699_v17 }
 0x27d   : > { %1449 = vmatprep.mubr.msk.f32.mxu1 %vm648_vm2, %v1591_v56  ;;  %v803_v11 = vsel %vm648_vm2, %v1591_v56, 0.0  ;;  %1606 = vpow2.f32 %v701_v19 }
 0x27e   : > { %804 = vadd.xlane.f32.xlu0 %v803_v11  ;;  %1608 = vpow2.f32 %v703_v21 }
 0x280   : > { %v1593_v58 = vpop.eup %1592 }
 0x281   : > { %1450 = vmatmul.mubr.msk.f32.gmra.mrb[6].mxu1 %vm648_vm2, %v1593_v58  ;;  %v806_v61 = vsel %vm648_vm2, %v1593_v58, 0.0  ;;  %v1595_v22 = vpop.eup %1594 }
 0x282   : > { %807 = vadd.xlane.f32.xlu1 %v806_v61  ;;  %v1597_v27 = vpop.eup %1596  ;;  %v778_v49 = vmul.f32 %v1595_v22, %v770_v43 }
 0x283   : > { %v1599_v28 = vpop.eup %1598  ;;  %v777_v40 = vmul.f32 %v1597_v27, %v769_v39 }
 0x284   : > { %v1601_v30 = vpop.eup %1600  ;;  %v779_v9 = vmul.f32 %v1599_v28, %v771_v63 }
 0x285   : > { %v1603_v31 = vpop.eup %1602  ;;  %v780_v54 = vmul.f32 %v1601_v30, %v772_v51 }
 0x286   : > { %v1605_v32 = vpop.eup %1604  ;;  %v781_v24 = vmul.f32 %v1603_v31, %v773_v23 }
 0x287   : > { %v1607_v33 = vpop.eup %1606  ;;  %v782_v16 = vmul.f32 %v1605_v32, %v774_v13 }
 0x288   : > { %v1609_v38 = vpop.eup %1608  ;;  %v783_v34 = vmul.f32 %v1607_v33, %v775_v26 }
 0x289   : > { %v784_v45 = vmul.f32 %v1609_v38, %v776_v36 }
 0x293   : > { %841 = vperm.xlu1 %1577, %v1595_v22  }
 0x294   : > { %836 = vperm.xlu0 %1576, %v1597_v27  }
 0x297   : > { %846 = vperm.xlu1 %1577, %v1599_v28  }
 0x298   : > { %851 = vperm.xlu0 %1576, %v1601_v30  }
 0x29b   : > { %856 = vperm.xlu1 %1577, %v1603_v31  }
 0x29c   : > { %861 = vperm.xlu0 %1576, %v1605_v32  }
 0x29f   : > { %866 = vperm.xlu1 %1577, %v1607_v33  }
 0x2a0   : > { %871 = vperm.xlu0 %1576, %v1609_v38  }
 0x2f3   : > { %v787_v41 = vpop.xlane.xlu1 %786 }
 0x2f4   : > { %v809_v44 = vadd.f32 %v787_v41, %v777_v40 }
 0x2f6   : > { %818 = vst.msk [vmem:[#allocation3] sm:$0xff] %vm464_vm0, %v809_v44 }
 0x2f7   : > { %v790_v50 = vpop.xlane.xlu0 %789 }
 0x2f8   : > { %v810_v53 = vadd.f32 %v790_v50, %v778_v49 }
 0x2fa   : > { %819 = vst.msk [vmem:[#allocation3 + $0x8] sm:$0xff] %vm464_vm0, %v810_v53 }
 0x2fb   : > { %v796_v60 = vpop.xlane.xlu1 %795 }
 0x2fc   : > { %v812_v7 = vadd.f32 %v796_v60, %v780_v54 }
 0x2fd   : > { %v1038_v8 = vld [vmem:[#allocation3] sm:$0xff] }
 0x2fe   : > { %821 = vst.msk [vmem:[#allocation3 + $0x18] sm:$0xff] %vm464_vm0, %v812_v7  ;;  %1610 = vrcp.f32 %v1038_v8 }
 0x2ff   : > { %v793_v10 = vpop.xlane.xlu0 %792 }
 0x300   : > { %v811_v14 = vadd.f32 %v793_v10, %v779_v9 }
 0x301   : > { %v1039_v15 = vld [vmem:[#allocation3 + $0x8] sm:$0xff] }
 0x302   : > { %820 = vst.msk [vmem:[#allocation3 + $0x10] sm:$0xff] %vm464_vm0, %v811_v14  ;;  %1612 = vrcp.f32 %v1039_v15 }
 0x303   : > { %v802_v18 = vpop.xlane.xlu1 %801 }
 0x304   : > { %v814_v57 = vadd.f32 %v802_v18, %v782_v16 }
 0x305   : > { %v1041_v59 = vld [vmem:[#allocation3 + $0x18] sm:$0xff] }
 0x306   : > { %823 = vst.msk [vmem:[#allocation3 + $0x28] sm:$0xff] %vm464_vm0, %v814_v57  ;;  %1614 = vrcp.f32 %v1041_v59 }
 0x307   : > { %v799_v25 = vpop.xlane.xlu0 %798 }
 0x308   : > { %v1611_v1 = vpop.eup %1610  ;;  %v813_v62 = vadd.f32 %v799_v25, %v781_v24 }
 0x309   : > { %1064 = vperm.xlu1 %1577, %v1611_v1   ;;  %v1040_v29 = vld [vmem:[#allocation3 + $0x10] sm:$0xff] }
 0x30a   : > { %822 = vst.msk [vmem:[#allocation3 + $0x20] sm:$0xff] %vm464_vm0, %v813_v62  ;;  %1616 = vrcp.f32 %v1040_v29 }
 0x30b   : > { %v805_v35 = vpop.xlane.xlu0 %804 }
 0x30c   : > { %v1613_v4 = vpop.eup %1612  ;;  %v815_v37 = vadd.f32 %v805_v35, %v783_v34 }
 0x30d   : > { %1069 = vperm.xlu0 %1576, %v1613_v4   ;;  %v1043_v42 = vld [vmem:[#allocation3 + $0x28] sm:$0xff] }
 0x30e   : > { %824 = vst.msk [vmem:[#allocation3 + $0x30] sm:$0xff] %vm464_vm0, %v815_v37  ;;  %1618 = vrcp.f32 %v1043_v42 }
 0x30f   : > { %v808_v46 = vpop.xlane.xlu1 %807 }
 0x310   : > { %v1615_v5 = vpop.eup %1614  ;;  %v816_v47 = vadd.f32 %v808_v46, %v784_v45 }
 0x311   : > { %1079 = vperm.xlu0 %1576, %v1615_v5   ;;  %v1042_v48 = vld [vmem:[#allocation3 + $0x20] sm:$0xff] }
 0x312   : > { %825 = vst.msk [vmem:[#allocation3 + $0x38] sm:$0xff] %vm464_vm0, %v816_v47  ;;  %1620 = vrcp.f32 %v1042_v48 }
 0x313   : > { %v842_v22 = vpop.permute.xlu1 %841  ;;  %v837_v27 = vpop.permute.xlu0 %836 }
 0x314   : > { %v1617_v52 = vpop.eup %1616  ;;  %v874_v38 = vmul.f32 0.0, %v837_v27  ;;  %v875_v43 = vmul.f32 0.0, %v842_v22 }
 0x315   : > { %1074 = vperm.xlu1 %1577, %v1617_v52   ;;  %v1044_v12 = vld [vmem:[#allocation3 + $0x30] sm:$0xff] }
 0x316   : > { %1622 = vrcp.f32 %v1044_v12 }
 0x317   : > { %v847_v28 = vpop.permute.xlu1 %846  ;;  %v852_v30 = vpop.permute.xlu0 %851 }
 0x318   : > { %v1619_v55 = vpop.eup %1618  ;;  %v877_v51 = vmul.f32 0.0, %v852_v30  ;;  %v876_v63 = vmul.f32 0.0, %v847_v28 }
 0x319   : > { %1089 = vperm.xlu0 %1576, %v1619_v55   ;;  %v1045_v56 = vld [vmem:[#allocation3 + $0x38] sm:$0xff] }
 0x31a   : > { %1624 = vrcp.f32 %v1045_v56 }
 0x31b   : > { %v857_v31 = vpop.permute.xlu1 %856  ;;  %v862_v32 = vpop.permute.xlu0 %861 }
 0x31c   : > { %v1621_v11 = vpop.eup %1620  ;;  %v879_v10 = vmul.f32 0.0, %v862_v32  ;;  %v878_v16 = vmul.f32 0.0, %v857_v31 }
 0x31d   : > { %1084 = vperm.xlu1 %1577, %v1621_v11  }
 0x31f   : > { %v867_v33 = vpop.permute.xlu1 %866  ;;  %v872_v40 = vpop.permute.xlu0 %871 }
 0x320   : > { %v1623_v58 = vpop.eup %1622  ;;  %v880_v59 = vmul.f32 0.0, %v867_v33  ;;  %v881_v1 = vmul.f32 0.0, %v872_v40 }
 0x321   : > { %1094 = vperm.xlu1 %1577, %v1623_v58  }
 0x324   : > { %v1625_v61 = vpop.eup %1624 }
 0x325   : > { %1099 = vperm.xlu0 %1576, %v1625_v61  }
 0x33c   : > { %v1442_v0 = vpop.f32.mrb[0].mxu1 }
 0x33d   : > { %v972_v2 = vpop.f32.mrb[1].mxu1  ;;  %v1012_v49 = vadd.f32 %v1442_v0, %v875_v43 }
 0x33e   : > { %v1011_v39 = vadd.f32 %v972_v2, %v874_v38 }
 0x345   : > { %v1445_v3 = vpop.f32.mrb[2].mxu1 }
 0x346   : > { %v982_v6 = vpop.f32.mrb[3].mxu1  ;;  %v1014_v54 = vadd.f32 %v1445_v3, %v877_v51 }
 0x347   : > { %v1013_v8 = vadd.f32 %v982_v6, %v876_v63 }
 0x34d   : > { %v1448_v20 = vpop.f32.mrb[4].mxu1 }
 0x34e   : > { %v992_v17 = vpop.f32.mrb[5].mxu1  ;;  %v1016_v14 = vadd.f32 %v1448_v20, %v879_v10 }
 0x34f   : > { %v1015_v23 = vadd.f32 %v992_v17, %v878_v16 }
 0x354   : > { %v1451_v19 = vpop.f32.mrb[6].mxu1 }
 0x355   : > { %v1002_v21 = vpop.f32.mrb[7].mxu1  ;;  %v1018_v29 = vadd.f32 %v1451_v19, %v881_v1 }
 0x356   : > { %v1017_v25 = vadd.f32 %v1002_v21, %v880_v59 }
 0x388   : > { %v1065_v41 = vpop.permute.xlu1 %1064 }
 0x389   : > { %v1102_v44 = vmul.f32 %v1065_v41, %v1011_v39 }
 0x38b   : > { %1110 = vst [vmem:[%s2103_s12] sm:$0xff] %v1102_v44 }
 0x38c   : > { %v1070_v50 = vpop.permute.xlu0 %1069 }
 0x38d   : > { %v1103_v53 = vmul.f32 %v1070_v50, %v1012_v49 }
 0x38f   : > { %1111 = vst [vmem:[%s2103_s12 + $0x8] sm:$0xff] %v1103_v53 }
 0x390   : > { %v1080_v60 = vpop.permute.xlu0 %1079 }
 0x391   : > { %v1105_v7 = vmul.f32 %v1080_v60, %v1014_v54 }
 0x392   : > { %v1173_v36 = vld [vmem:[%s2103_s12] sm:$0xff] (%p1850_p13) }
 0x393   : > { %1113 = vst [vmem:[%s2103_s12 + $0x18] sm:$0xff] %v1105_v7  ;;  %1174 = vst [vmem:[%s1131_s4] sm:$0xff] (%p1850_p13), %v1173_v36 }
 0x394   : > { %v1075_v9 = vpop.permute.xlu1 %1074 }
 0x395   : > { %v1104_v13 = vmul.f32 %v1075_v9, %v1013_v8 }
 0x396   : > { %v1175_v4 = vld [vmem:[%s2103_s12 + $0x8] sm:$0xff] (%p1850_p13) }
 0x397   : > { %1112 = vst [vmem:[%s2103_s12 + $0x10] sm:$0xff] %v1104_v13  ;;  %1176 = vst [vmem:[%s1131_s4 + $0x10] sm:$0xff] (%p1850_p13), %v1175_v4 }
 0x398   : > { %v1090_v15 = vpop.permute.xlu0 %1089 }
 0x399   : > { %v1107_v18 = vmul.f32 %v1090_v15, %v1016_v14 }
 0x39a   : > { %v1179_v42 = vld [vmem:[%s2103_s12 + $0x18] sm:$0xff] (%p1850_p13) }
 0x39b   : > { %1115 = vst [vmem:[%s2103_s12 + $0x28] sm:$0xff] %v1107_v18  ;;  %1180 = vst [vmem:[%s1131_s4 + $0x30] sm:$0xff] (%p1850_p13), %v1179_v42 }
 0x39c   : > { %v1085_v57 = vpop.permute.xlu1 %1084 }
 0x39d   : > { %v1106_v24 = vmul.f32 %v1085_v57, %v1015_v23 }
 0x39e   : > { %v1177_v37 = vld [vmem:[%s2103_s12 + $0x10] sm:$0xff] (%p1850_p13) }
 0x39f   : > { %1114 = vst [vmem:[%s2103_s12 + $0x20] sm:$0xff] %v1106_v24  ;;  %1178 = vst [vmem:[%s1131_s4 + $0x20] sm:$0xff] (%p1850_p13), %v1177_v37 }
 0x3a0   : > { %v1095_v26 = vpop.permute.xlu1 %1094 }
 0x3a1   : > { %v1108_v62 = vmul.f32 %v1095_v26, %v1017_v25  ;;  %1124 = sbr.rel (!%p1850_p13) target bundleno = 944 (0x3b0), region = 158 }
 0x3a2   : > { %v1183_v46 = vld [vmem:[%s2103_s12 + $0x28] sm:$0xff] (%p1850_p13) }
 0x3a3   : > { %1116 = vst [vmem:[%s2103_s12 + $0x30] sm:$0xff] %v1108_v62  ;;  %1184 = vst [vmem:[%s1131_s4 + $0x50] sm:$0xff] (%p1850_p13), %v1183_v46 }
 0x3a4   : > { %v1100_v34 = vpop.permute.xlu0 %1099 }
 0x3a5   : > { %v1109_v35 = vmul.f32 %v1100_v34, %v1018_v29 }
 0x3a6   : > { %v1181_v45 = vld [vmem:[%s2103_s12 + $0x20] sm:$0xff] (%p1850_p13) }
 0x3a7   : > { %1117 = vst [vmem:[%s2103_s12 + $0x38] sm:$0xff] %v1109_v35  ;;  %1182 = vst [vmem:[%s1131_s4 + $0x40] sm:$0xff] (%p1850_p13), %v1181_v45 }
 0x3aa   : > { %v1185_v5 = vld [vmem:[%s2103_s12 + $0x30] sm:$0xff] }
 0x3ab   : > { %1186 = vst [vmem:[%s1131_s4 + $0x60] sm:$0xff] %v1185_v5 }
 0x3ae   : > { %v1187_v47 = vld [vmem:[%s2103_s12 + $0x38] sm:$0xff] }
 0x3af   : > { %1188 = vst [vmem:[%s1131_s4 + $0x70] sm:$0xff] %v1187_v47 }
 0x3b0 PF: > { %s13_s22 = sadd.s32 1, %s1712_s22   ;;  %s2174_s30 = sld [smem:[#allocation9_spill]] }
 0x3b1   : > { %p10_p4 = scmp.ge.s32.totalorder %s13_s22, 6   ;;  %s2175_s12 = smov %s1676_s13 }
 0x3b2   : > { %s2176_s13 = smov %s1855_s26  ;;  %s2177_s14 = smov %s1684_s15 }
 0x3b3   : > { %s2178_s15 = smov %s1833_s28  ;;  %s2179_s16 = smov %s1692_s17 }
 0x3b4   : > { %s2180_s17 = smov %s1830_s11  ;;  %s2181_s18 = smov %s1704_s20 }
 0x3b5   : > { %s2182_s19 = smov %s1708_s21  ;;  %s2183_s20 = smov %s2186_s24 }
 0x3b6   : > { %s2184_s21 = smov %s2174_s30  ;;  %12 = sbr.rel (!%p10_p4) target bundleno = 8 (0x8), region = 243 }

// kernel: attention_forward.5
= control target key start
LH: loop header
LB: loop body
LE: loop exit
PB: predicated region body
PF: predicated region fallthrough
CT: control target
= control target key end

     0   :  { %s1057_s1 = inlined_call_operand.vmem [shape: f32[256,256], index: 1, kind: input, shape index: {}]   ;;  %s1058_s0 = inlined_call_operand.vmem [shape: f32[128,256], index: 0, kind: input, shape index: {}]   ;;  %s1059_s2 = inlined_call_operand.vmem [shape: f32[1,256], index: 2, kind: input, shape index: {}]   ;;  %s1060_s3 = inlined_call_operand.vmem [shape: f32[128,256], index: 3, kind: output, shape index: {}]  }
   0x1   :  { %v115_v0 = vld [vmem:[%s1057_s1 + $0x8] sm:$0xff]  ;;  %v117_v1 = vld [vmem:[%s1057_s1 + $0x18] sm:$0xff]  ;;  %v114_v2 = vld [vmem:[%s1057_s1] sm:$0xff] }
   0x2   :  { %v518_v3 = vpack.c.bf16 %v117_v1, %v115_v0  ;;  %v116_v4 = vld [vmem:[%s1057_s1 + $0x10] sm:$0xff]  ;;  %v119_v5 = vld [vmem:[%s1057_s1 + $0x28] sm:$0xff]  ;;  %v121_v6 = vld [vmem:[%s1057_s1 + $0x38] sm:$0xff] }
   0x3   :  { %v520_v7 = vpack.c.bf16 %v116_v4, %v114_v2  ;;  %v522_v8 = vpack.c.bf16 %v121_v6, %v119_v5  ;;  %v118_v9 = vld [vmem:[%s1057_s1 + $0x20] sm:$0xff]  ;;  %v120_v10 = vld [vmem:[%s1057_s1 + $0x30] sm:$0xff]  ;;  %v123_v11 = vld [vmem:[%s1057_s1 + $0x48] sm:$0xff] }
   0x4   :  { %519 = vmatprep.subr.bf16.mxu0 %v518_v3  ;;  %582 = vmatprep.subr.bf16.mxu1 %v518_v3  ;;  %v125_v12 = vld [vmem:[%s1057_s1 + $0x58] sm:$0xff]  ;;  %v524_v13 = vpack.c.bf16 %v120_v10, %v118_v9  ;;  %v122_v15 = vld [vmem:[%s1057_s1 + $0x40] sm:$0xff]  ;;  %v124_v16 = vld [vmem:[%s1057_s1 + $0x50] sm:$0xff] }
   0x5   :  { %521 = vmatpush1.bf16.msra.mxu0 %v520_v7  ;;  %598 = vmatpush1.bf16.msra.mxu1 %v520_v7  ;;  %v526_v14 = vpack.c.bf16 %v125_v12, %v123_v11  ;;  %v127_v17 = vld [vmem:[%s1057_s1 + $0x68] sm:$0xff]  ;;  %v129_v18 = vld [vmem:[%s1057_s1 + $0x78] sm:$0xff]  ;;  %v528_v19 = vpack.c.bf16 %v124_v16, %v122_v15  ;;  %v126_v21 = vld [vmem:[%s1057_s1 + $0x60] sm:$0xff] }
   0x6   :  { %523 = vmatprep.subr.bf16.mxu0 %v522_v8  ;;  %583 = vmatprep.subr.bf16.mxu1 %v522_v8  ;;  %v530_v20 = vpack.c.bf16 %v129_v18, %v127_v17  ;;  %v128_v22 = vld [vmem:[%s1057_s1 + $0x70] sm:$0xff]  ;;  %v131_v23 = vld [vmem:[%s1057_s1 + $0x88] sm:$0xff]  ;;  %v133_v24 = vld [vmem:[%s1057_s1 + $0x98] sm:$0xff] }
   0x7   :  { %v532_v25 = vpack.c.bf16 %v128_v22, %v126_v21  ;;  %v534_v26 = vpack.c.bf16 %v133_v24, %v131_v23  ;;  %v130_v27 = vld [vmem:[%s1057_s1 + $0x80] sm:$0xff]  ;;  %v132_v28 = vld [vmem:[%s1057_s1 + $0x90] sm:$0xff]  ;;  %v135_v29 = vld [vmem:[%s1057_s1 + $0xa8] sm:$0xff] }
   0x8   :  { %v137_v30 = vld [vmem:[%s1057_s1 + $0xb8] sm:$0xff]  ;;  %v536_v31 = vpack.c.bf16 %v132_v28, %v130_v27  ;;  %v134_v33 = vld [vmem:[%s1057_s1 + $0xa0] sm:$0xff]  ;;  %v136_v34 = vld [vmem:[%s1057_s1 + $0xb0] sm:$0xff] }
   0x9   :  { %525 = vmatpush1.bf16.msra.mxu0 %v524_v13  ;;  %599 = vmatpush1.bf16.msra.mxu1 %v524_v13  ;;  %v538_v32 = vpack.c.bf16 %v137_v30, %v135_v29  ;;  %v139_v35 = vld [vmem:[%s1057_s1 + $0xc8] sm:$0xff]  ;;  %v141_v36 = vld [vmem:[%s1057_s1 + $0xd8] sm:$0xff]  ;;  %v540_v37 = vpack.c.bf16 %v136_v34, %v134_v33  ;;  %v138_v38 = vld [vmem:[%s1057_s1 + $0xc0] sm:$0xff] }
   0xa   :  { %527 = vmatprep.subr.bf16.mxu0 %v526_v14  ;;  %584 = vmatprep.subr.bf16.mxu1 %v526_v14  ;;  %v542_v39 = vpack.c.bf16 %v141_v36, %v139_v35  ;;  %v140_v40 = vld [vmem:[%s1057_s1 + $0xd0] sm:$0xff]  ;;  %v83_v41 = vld [vmem:[%s1058_s0 + $0x8] sm:$0xff]  ;;  %v145_v44 = vld [vmem:[%s1057_s1 + $0xf8] sm:$0xff] }
   0xb   :  { %v99_v42 = vld [vmem:[%s1058_s0 + $0x88] sm:$0xff]  ;;  %242 = vmatprep.mubr.f32.mxu0 %v83_v41  ;;  %v544_v45 = vpack.c.bf16 %v140_v40, %v138_v38  ;;  %v142_v47 = vld [vmem:[%s1057_s1 + $0xe0] sm:$0xff]  ;;  %v144_v48 = vld [vmem:[%s1057_s1 + $0xf0] sm:$0xff] }
   0xc   :  { %v143_v43 = vld [vmem:[%s1057_s1 + $0xe8] sm:$0xff]  ;;  %290 = vmatprep.mubr.f32.mxu1 %v99_v42  ;;  %v149_v50 = vld [vmem:[%s1057_s1 + $0x118] sm:$0xff]  ;;  %v548_v51 = vpack.c.bf16 %v144_v48, %v142_v47  ;;  %v146_v53 = vld [vmem:[%s1057_s1 + $0x100] sm:$0xff] }
   0xd   :  { %529 = vmatpush1.bf16.msra.mxu0 %v528_v19  ;;  %600 = vmatpush1.bf16.msra.mxu1 %v528_v19  ;;  %v546_v46 = vpack.c.bf16 %v145_v44, %v143_v43  ;;  %v147_v49 = vld [vmem:[%s1057_s1 + $0x108] sm:$0xff]  ;;  %v148_v54 = vld [vmem:[%s1057_s1 + $0x110] sm:$0xff]  ;;  %v153_v56 = vld [vmem:[%s1057_s1 + $0x138] sm:$0xff] }
   0xe   :  { %531 = vmatprep.subr.bf16.mxu0 %v530_v20  ;;  %585 = vmatprep.subr.bf16.mxu1 %v530_v20  ;;  %v550_v52 = vpack.c.bf16 %v149_v50, %v147_v49  ;;  %v151_v55 = vld [vmem:[%s1057_s1 + $0x128] sm:$0xff]  ;;  %v552_v57 = vpack.c.bf16 %v148_v54, %v146_v53  ;;  %v150_v59 = vld [vmem:[%s1057_s1 + $0x120] sm:$0xff]  ;;  %v152_v60 = vld [vmem:[%s1057_s1 + $0x130] sm:$0xff] }
   0xf   :  { %v554_v58 = vpack.c.bf16 %v153_v56, %v151_v55  ;;  %v155_v61 = vld [vmem:[%s1057_s1 + $0x148] sm:$0xff]  ;;  %v157_v62 = vld [vmem:[%s1057_s1 + $0x158] sm:$0xff]  ;;  %v556_v63 = vpack.c.bf16 %v152_v60, %v150_v59  ;;  %v154_v1 = vld [vmem:[%s1057_s1 + $0x140] sm:$0xff] }
  0x10   :  { %v558_v0 = vpack.c.bf16 %v157_v62, %v155_v61  ;;  %v156_v2 = vld [vmem:[%s1057_s1 + $0x150] sm:$0xff]  ;;  %v159_v3 = vld [vmem:[%s1057_s1 + $0x168] sm:$0xff]  ;;  %v161_v4 = vld [vmem:[%s1057_s1 + $0x178] sm:$0xff] }
  0x11   :  { %533 = vmatpush1.bf16.msra.mxu0 %v532_v25  ;;  %601 = vmatpush1.bf16.msra.mxu1 %v532_v25  ;;  %v560_v5 = vpack.c.bf16 %v156_v2, %v154_v1  ;;  %v562_v6 = vpack.c.bf16 %v161_v4, %v159_v3  ;;  %v158_v7 = vld [vmem:[%s1057_s1 + $0x160] sm:$0xff]  ;;  %v160_v8 = vld [vmem:[%s1057_s1 + $0x170] sm:$0xff]  ;;  %v163_v9 = vld [vmem:[%s1057_s1 + $0x188] sm:$0xff] }
  0x12   :  { %535 = vmatprep.subr.bf16.mxu0 %v534_v26  ;;  %586 = vmatprep.subr.bf16.mxu1 %v534_v26  ;;  %v165_v10 = vld [vmem:[%s1057_s1 + $0x198] sm:$0xff]  ;;  %v564_v11 = vpack.c.bf16 %v160_v8, %v158_v7  ;;  %v162_v13 = vld [vmem:[%s1057_s1 + $0x180] sm:$0xff]  ;;  %v164_v14 = vld [vmem:[%s1057_s1 + $0x190] sm:$0xff] }
  0x13   :  { %v566_v12 = vpack.c.bf16 %v165_v10, %v163_v9  ;;  %v167_v15 = vld [vmem:[%s1057_s1 + $0x1a8] sm:$0xff]  ;;  %v169_v16 = vld [vmem:[%s1057_s1 + $0x1b8] sm:$0xff]  ;;  %v568_v17 = vpack.c.bf16 %v164_v14, %v162_v13  ;;  %v166_v19 = vld [vmem:[%s1057_s1 + $0x1a0] sm:$0xff] }
  0x14   :  { %v570_v18 = vpack.c.bf16 %v169_v16, %v167_v15  ;;  %v168_v20 = vld [vmem:[%s1057_s1 + $0x1b0] sm:$0xff]  ;;  %v171_v21 = vld [vmem:[%s1057_s1 + $0x1c8] sm:$0xff]  ;;  %v173_v22 = vld [vmem:[%s1057_s1 + $0x1d8] sm:$0xff] }
  0x15   :  { %537 = vmatpush1.bf16.msra.mxu0 %v536_v31  ;;  %602 = vmatpush1.bf16.msra.mxu1 %v536_v31  ;;  %v572_v23 = vpack.c.bf16 %v168_v20, %v166_v19  ;;  %v574_v24 = vpack.c.bf16 %v173_v22, %v171_v21  ;;  %v170_v25 = vld [vmem:[%s1057_s1 + $0x1c0] sm:$0xff]  ;;  %v172_v26 = vld [vmem:[%s1057_s1 + $0x1d0] sm:$0xff]  ;;  %v175_v27 = vld [vmem:[%s1057_s1 + $0x1e8] sm:$0xff] }
  0x16   :  { %539 = vmatprep.subr.bf16.mxu0 %v538_v32  ;;  %587 = vmatprep.subr.bf16.mxu1 %v538_v32  ;;  %v177_v28 = vld [vmem:[%s1057_s1 + $0x1f8] sm:$0xff]  ;;  %v576_v29 = vpack.c.bf16 %v172_v26, %v170_v25  ;;  %v174_v31 = vld [vmem:[%s1057_s1 + $0x1e0] sm:$0xff]  ;;  %v176_v32 = vld [vmem:[%s1057_s1 + $0x1f0] sm:$0xff] }
  0x17   :  { %v578_v30 = vpack.c.bf16 %v177_v28, %v175_v27  ;;  %v580_v33 = vpack.c.bf16 %v176_v32, %v174_v31  ;;  %v82_v34 = vld [vmem:[%s1058_s0] sm:$0xff]  ;;  %v85_v36 = vld [vmem:[%s1058_s0 + $0x18] sm:$0xff]  ;;  %v84_v38 = vld [vmem:[%s1058_s0 + $0x10] sm:$0xff] }
  0x18   :  { %v98_v35 = vld [vmem:[%s1058_s0 + $0x80] sm:$0xff]  ;;  %v87_v40 = vld [vmem:[%s1058_s0 + $0x28] sm:$0xff]  ;;  %v89_v44 = vld [vmem:[%s1058_s0 + $0x38] sm:$0xff] }
  0x19   :  { %541 = vmatpush1.bf16.msra.mxu0 %v540_v37  ;;  %603 = vmatpush1.bf16.msra.mxu1 %v540_v37  ;;  %v101_v37 = vld [vmem:[%s1058_s0 + $0x98] sm:$0xff]  ;;  %v103_v41 = vld [vmem:[%s1058_s0 + $0xa8] sm:$0xff]  ;;  %v86_v42 = vld [vmem:[%s1058_s0 + $0x20] sm:$0xff] }
  0x1a   :  { %543 = vmatprep.subr.bf16.mxu0 %v542_v39  ;;  %588 = vmatprep.subr.bf16.mxu1 %v542_v39  ;;  %v100_v39 = vld [vmem:[%s1058_s0 + $0x90] sm:$0xff]  ;;  %v102_v43 = vld [vmem:[%s1058_s0 + $0xa0] sm:$0xff]  ;;  %v91_v48 = vld [vmem:[%s1058_s0 + $0x48] sm:$0xff] }
  0x1b   :  { %v104_v47 = vld [vmem:[%s1058_s0 + $0xb0] sm:$0xff]  ;;  %v107_v49 = vld [vmem:[%s1058_s0 + $0xc8] sm:$0xff]  ;;  %v90_v50 = vld [vmem:[%s1058_s0 + $0x40] sm:$0xff] }
  0x1c   :  { %v109_v53 = vld [vmem:[%s1058_s0 + $0xd8] sm:$0xff]  ;;  %v92_v54 = vld [vmem:[%s1058_s0 + $0x50] sm:$0xff]  ;;  %v95_v56 = vld [vmem:[%s1058_s0 + $0x68] sm:$0xff] }
  0x1d   :  { %545 = vmatpush1.bf16.msra.mxu0 %v544_v45  ;;  %604 = vmatpush1.bf16.msra.mxu1 %v544_v45  ;;  %v105_v45 = vld [vmem:[%s1058_s0 + $0xb8] sm:$0xff]  ;;  %v108_v55 = vld [vmem:[%s1058_s0 + $0xd0] sm:$0xff]  ;;  %v110_v59 = vld [vmem:[%s1058_s0 + $0xe0] sm:$0xff] }
  0x1e   :  { %547 = vmatprep.subr.bf16.mxu0 %v546_v46  ;;  %589 = vmatprep.subr.bf16.mxu1 %v546_v46  ;;  %v88_v46 = vld [vmem:[%s1058_s0 + $0x30] sm:$0xff]  ;;  %v97_v60 = vld [vmem:[%s1058_s0 + $0x78] sm:$0xff]  ;;  %v438_v3 = vld [vmem:[%s1059_s2] sm:$0x3] }
  0x1f   :  { %v113_v61 = vld [vmem:[%s1058_s0 + $0xf8] sm:$0xff]  ;;  %v96_v62 = vld [vmem:[%s1058_s0 + $0x70] sm:$0xff] }
  0x21   :  { %549 = vmatpush1.bf16.msra.mxu0 %v548_v51  ;;  %605 = vmatpush1.bf16.msra.mxu1 %v548_v51  ;;  %v106_v51 = vld [vmem:[%s1058_s0 + $0xc0] sm:$0xff] }
  0x22   :  { %551 = vmatprep.subr.bf16.mxu0 %v550_v52  ;;  %590 = vmatprep.subr.bf16.mxu1 %v550_v52  ;;  %v93_v52 = vld [vmem:[%s1058_s0 + $0x58] sm:$0xff] }
  0x25   :  { %553 = vmatpush1.bf16.msra.mxu0 %v552_v57  ;;  %606 = vmatpush1.bf16.msra.mxu1 %v552_v57  ;;  %v111_v57 = vld [vmem:[%s1058_s0 + $0xe8] sm:$0xff] }
  0x26   :  { %555 = vmatprep.subr.bf16.mxu0 %v554_v58  ;;  %591 = vmatprep.subr.bf16.mxu1 %v554_v58  ;;  %v94_v58 = vld [vmem:[%s1058_s0 + $0x60] sm:$0xff] }
  0x29   :  { %557 = vmatpush1.bf16.msra.mxu0 %v556_v63  ;;  %607 = vmatpush1.bf16.msra.mxu1 %v556_v63  ;;  %v112_v63 = vld [vmem:[%s1058_s0 + $0xf0] sm:$0xff] }
  0x2a   :  { %559 = vmatprep.subr.bf16.mxu0 %v558_v0  ;;  %592 = vmatprep.subr.bf16.mxu1 %v558_v0  ;;  %v440_v0 = vlaneseq }
  0x2c   :  { %v441_v1 = vshrl.u32 %v440_v0, 7 }
  0x2d   :  { %561 = vmatpush1.bf16.msra.mxu0 %v560_v5  ;;  %608 = vmatpush1.bf16.msra.mxu1 %v560_v5 }
  0x2e   :  { %563 = vmatprep.subr.bf16.mxu0 %v562_v6  ;;  %593 = vmatprep.subr.bf16.mxu1 %v562_v6  ;;  %v442_v2 = vsub.s32 0, %v441_v1  ;;  %v446_v4 = vsub.s32 1, %v441_v1 }
  0x30   :  { %v925_v5 = vrot.slane %v438_v3, %v442_v2  ;;  %v927_v6 = vrot.slane %v438_v3, %v446_v4 }
  0x31   :  { %565 = vmatpush1.bf16.msra.mxu0 %v564_v11  ;;  %609 = vmatpush1.bf16.msra.mxu1 %v564_v11 }
  0x32   :  { %567 = vmatprep.subr.bf16.mxu0 %v566_v12  ;;  %594 = vmatprep.subr.bf16.mxu1 %v566_v12 }
  0x35   :  { %569 = vmatpush1.bf16.msra.mxu0 %v568_v17  ;;  %610 = vmatpush1.bf16.msra.mxu1 %v568_v17 }
  0x36   :  { %571 = vmatprep.subr.bf16.mxu0 %v570_v18  ;;  %595 = vmatprep.subr.bf16.mxu1 %v570_v18 }
  0x39   :  { %573 = vmatpush1.bf16.msra.mxu0 %v572_v23  ;;  %611 = vmatpush1.bf16.msra.mxu1 %v572_v23 }
  0x3a   :  { %575 = vmatprep.subr.bf16.mxu0 %v574_v24  ;;  %596 = vmatprep.subr.bf16.mxu1 %v574_v24 }
  0x3d   :  { %577 = vmatpush1.bf16.msra.mxu0 %v576_v29  ;;  %612 = vmatpush1.bf16.msra.mxu1 %v576_v29 }
  0x3e   :  { %579 = vmatprep.subr.bf16.mxu0 %v578_v30  ;;  %597 = vmatprep.subr.bf16.mxu1 %v578_v30 }
  0x41   :  { %581 = vmatpush1.bf16.msra.mxu0 %v580_v33  ;;  %613 = vmatpush1.bf16.msra.mxu1 %v580_v33 }
  0x44   :  { %243 = vmatmul.mubr.f32.vlgmr.msra.gmra.mrb[0].mxu0 %v82_v34  ;;  %291 = vmatmul.mubr.f32.vlgmr.msra.gmra.mrb[0].mxu1 %v98_v35 }
  0x45   :  { %248 = vmatprep.mubr.f32.mxu0 %v85_v36  ;;  %296 = vmatprep.mubr.f32.mxu1 %v101_v37 }
  0x48   :  { %249 = vmatmul.mubr.f32.gmra.mrb[2].mxu0 %v84_v38  ;;  %297 = vmatmul.mubr.f32.gmra.mrb[2].mxu1 %v100_v39 }
  0x49   :  { %254 = vmatprep.mubr.f32.mxu0 %v87_v40  ;;  %302 = vmatprep.mubr.f32.mxu1 %v103_v41 }
  0x4c   :  { %255 = vmatmul.mubr.f32.gmra.mrb[4].mxu0 %v86_v42  ;;  %303 = vmatmul.mubr.f32.gmra.mrb[4].mxu1 %v102_v43 }
  0x4d   :  { %260 = vmatprep.mubr.f32.mxu0 %v89_v44  ;;  %308 = vmatprep.mubr.f32.mxu1 %v105_v45 }
  0x50   :  { %261 = vmatmul.mubr.f32.gmra.mrb[6].mxu0 %v88_v46  ;;  %309 = vmatmul.mubr.f32.gmra.mrb[6].mxu1 %v104_v47 }
  0x51   :  { %266 = vmatprep.mubr.f32.mxu0 %v91_v48  ;;  %314 = vmatprep.mubr.f32.mxu1 %v107_v49 }
  0x54   :  { %267 = vmatmul.mubr.f32.gmra.mrb[8].mxu0 %v90_v50  ;;  %315 = vmatmul.mubr.f32.gmra.mrb[8].mxu1 %v106_v51 }
  0x55   :  { %272 = vmatprep.mubr.f32.mxu0 %v93_v52  ;;  %320 = vmatprep.mubr.f32.mxu1 %v109_v53 }
  0x58   :  { %273 = vmatmul.mubr.f32.gmra.mrb[10].mxu0 %v92_v54  ;;  %321 = vmatmul.mubr.f32.gmra.mrb[10].mxu1 %v108_v55 }
  0x59   :  { %278 = vmatprep.mubr.f32.mxu0 %v95_v56  ;;  %326 = vmatprep.mubr.f32.mxu1 %v111_v57 }
  0x5c   :  { %279 = vmatmul.mubr.f32.gmra.mrb[12].mxu0 %v94_v58  ;;  %327 = vmatmul.mubr.f32.gmra.mrb[12].mxu1 %v110_v59 }
  0x5d   :  { %284 = vmatprep.mubr.f32.mxu0 %v97_v60  ;;  %332 = vmatprep.mubr.f32.mxu1 %v113_v61 }
  0x60   :  { %285 = vmatmul.mubr.f32.gmra.mrb[14].mxu0 %v96_v62  ;;  %333 = vmatmul.mubr.f32.gmra.mrb[14].mxu1 %v112_v63 }
 0x117   :  { %v244_v7 = vpop.f32.mrb[0].mxu0  ;;  %v292_v8 = vpop.f32.mrb[0].mxu1 }
 0x118   :  { %v450_v9 = vadd.f32 %v925_v5, %v244_v7  ;;  %v466_v10 = vadd.f32 %v925_v5, %v292_v8  ;;  %v246_v11 = vpop.f32.mrb[1].mxu0  ;;  %v294_v12 = vpop.f32.mrb[1].mxu1 }
 0x119   :  { %v451_v13 = vadd.f32 %v927_v6, %v246_v11  ;;  %v467_v14 = vadd.f32 %v927_v6, %v294_v12 }
 0x11a   :  { %482 = vst [vmem:[%s1060_s3] sm:$0xff] %v450_v9  ;;  %498 = vst [vmem:[%s1060_s3 + $0x80] sm:$0xff] %v466_v10 }
 0x11b   :  { %483 = vst [vmem:[%s1060_s3 + $0x8] sm:$0xff] %v451_v13  ;;  %499 = vst [vmem:[%s1060_s3 + $0x88] sm:$0xff] %v467_v14  ;;  %v250_v15 = vpop.f32.mrb[2].mxu0  ;;  %v298_v16 = vpop.f32.mrb[2].mxu1 }
 0x11c   :  { %v452_v17 = vadd.f32 %v925_v5, %v250_v15  ;;  %v468_v18 = vadd.f32 %v925_v5, %v298_v16  ;;  %v252_v19 = vpop.f32.mrb[3].mxu0  ;;  %v300_v20 = vpop.f32.mrb[3].mxu1 }
 0x11d   :  { %v453_v21 = vadd.f32 %v927_v6, %v252_v19  ;;  %v469_v22 = vadd.f32 %v927_v6, %v300_v20 }
 0x11e   :  { %484 = vst [vmem:[%s1060_s3 + $0x10] sm:$0xff] %v452_v17  ;;  %500 = vst [vmem:[%s1060_s3 + $0x90] sm:$0xff] %v468_v18 }
 0x11f   :  { %485 = vst [vmem:[%s1060_s3 + $0x18] sm:$0xff] %v453_v21  ;;  %501 = vst [vmem:[%s1060_s3 + $0x98] sm:$0xff] %v469_v22  ;;  %v256_v23 = vpop.f32.mrb[4].mxu0  ;;  %v304_v24 = vpop.f32.mrb[4].mxu1 }
 0x120   :  { %v454_v25 = vadd.f32 %v925_v5, %v256_v23  ;;  %v470_v26 = vadd.f32 %v925_v5, %v304_v24  ;;  %v258_v27 = vpop.f32.mrb[5].mxu0  ;;  %v306_v28 = vpop.f32.mrb[5].mxu1 }
 0x121   :  { %v455_v29 = vadd.f32 %v927_v6, %v258_v27  ;;  %v471_v30 = vadd.f32 %v927_v6, %v306_v28 }
 0x122   :  { %486 = vst [vmem:[%s1060_s3 + $0x20] sm:$0xff] %v454_v25  ;;  %502 = vst [vmem:[%s1060_s3 + $0xa0] sm:$0xff] %v470_v26 }
 0x123   :  { %487 = vst [vmem:[%s1060_s3 + $0x28] sm:$0xff] %v455_v29  ;;  %503 = vst [vmem:[%s1060_s3 + $0xa8] sm:$0xff] %v471_v30  ;;  %v262_v31 = vpop.f32.mrb[6].mxu0  ;;  %v310_v32 = vpop.f32.mrb[6].mxu1 }
 0x124   :  { %v456_v33 = vadd.f32 %v925_v5, %v262_v31  ;;  %v472_v34 = vadd.f32 %v925_v5, %v310_v32  ;;  %v264_v35 = vpop.f32.mrb[7].mxu0  ;;  %v312_v36 = vpop.f32.mrb[7].mxu1 }
 0x125   :  { %v457_v37 = vadd.f32 %v927_v6, %v264_v35  ;;  %v473_v38 = vadd.f32 %v927_v6, %v312_v36 }
 0x126   :  { %488 = vst [vmem:[%s1060_s3 + $0x30] sm:$0xff] %v456_v33  ;;  %504 = vst [vmem:[%s1060_s3 + $0xb0] sm:$0xff] %v472_v34 }
 0x127   :  { %489 = vst [vmem:[%s1060_s3 + $0x38] sm:$0xff] %v457_v37  ;;  %505 = vst [vmem:[%s1060_s3 + $0xb8] sm:$0xff] %v473_v38  ;;  %v268_v39 = vpop.f32.mrb[8].mxu0  ;;  %v316_v40 = vpop.f32.mrb[8].mxu1 }
 0x128   :  { %v458_v41 = vadd.f32 %v925_v5, %v268_v39  ;;  %v474_v42 = vadd.f32 %v925_v5, %v316_v40  ;;  %v270_v43 = vpop.f32.mrb[9].mxu0  ;;  %v318_v44 = vpop.f32.mrb[9].mxu1 }
 0x129   :  { %v459_v45 = vadd.f32 %v927_v6, %v270_v43  ;;  %v475_v46 = vadd.f32 %v927_v6, %v318_v44 }
 0x12a   :  { %490 = vst [vmem:[%s1060_s3 + $0x40] sm:$0xff] %v458_v41  ;;  %506 = vst [vmem:[%s1060_s3 + $0xc0] sm:$0xff] %v474_v42 }
 0x12b   :  { %491 = vst [vmem:[%s1060_s3 + $0x48] sm:$0xff] %v459_v45  ;;  %507 = vst [vmem:[%s1060_s3 + $0xc8] sm:$0xff] %v475_v46  ;;  %v274_v47 = vpop.f32.mrb[10].mxu0  ;;  %v322_v48 = vpop.f32.mrb[10].mxu1 }
 0x12c   :  { %v460_v49 = vadd.f32 %v925_v5, %v274_v47  ;;  %v476_v50 = vadd.f32 %v925_v5, %v322_v48  ;;  %v276_v51 = vpop.f32.mrb[11].mxu0  ;;  %v324_v52 = vpop.f32.mrb[11].mxu1 }
 0x12d   :  { %v461_v53 = vadd.f32 %v927_v6, %v276_v51  ;;  %v477_v54 = vadd.f32 %v927_v6, %v324_v52 }
 0x12e   :  { %492 = vst [vmem:[%s1060_s3 + $0x50] sm:$0xff] %v460_v49  ;;  %508 = vst [vmem:[%s1060_s3 + $0xd0] sm:$0xff] %v476_v50 }
 0x12f   :  { %493 = vst [vmem:[%s1060_s3 + $0x58] sm:$0xff] %v461_v53  ;;  %509 = vst [vmem:[%s1060_s3 + $0xd8] sm:$0xff] %v477_v54  ;;  %v280_v55 = vpop.f32.mrb[12].mxu0  ;;  %v328_v56 = vpop.f32.mrb[12].mxu1 }
 0x130   :  { %v462_v57 = vadd.f32 %v925_v5, %v280_v55  ;;  %v478_v58 = vadd.f32 %v925_v5, %v328_v56  ;;  %v282_v59 = vpop.f32.mrb[13].mxu0  ;;  %v330_v60 = vpop.f32.mrb[13].mxu1 }
 0x131   :  { %v463_v61 = vadd.f32 %v927_v6, %v282_v59  ;;  %v479_v62 = vadd.f32 %v927_v6, %v330_v60 }
 0x132   :  { %494 = vst [vmem:[%s1060_s3 + $0x60] sm:$0xff] %v462_v57  ;;  %510 = vst [vmem:[%s1060_s3 + $0xe0] sm:$0xff] %v478_v58 }
 0x133   :  { %495 = vst [vmem:[%s1060_s3 + $0x68] sm:$0xff] %v463_v61  ;;  %511 = vst [vmem:[%s1060_s3 + $0xe8] sm:$0xff] %v479_v62  ;;  %v286_v63 = vpop.f32.mrb[14].mxu0  ;;  %v334_v0 = vpop.f32.mrb[14].mxu1 }
 0x134   :  { %v464_v1 = vadd.f32 %v925_v5, %v286_v63  ;;  %v480_v2 = vadd.f32 %v925_v5, %v334_v0  ;;  %v288_v3 = vpop.f32.mrb[15].mxu0  ;;  %v336_v4 = vpop.f32.mrb[15].mxu1 }
 0x135   :  { %v465_v7 = vadd.f32 %v927_v6, %v288_v3  ;;  %v481_v8 = vadd.f32 %v927_v6, %v336_v4 }
 0x136   :  { %496 = vst [vmem:[%s1060_s3 + $0x70] sm:$0xff] %v464_v1  ;;  %512 = vst [vmem:[%s1060_s3 + $0xf0] sm:$0xff] %v480_v2 }
 0x137   :  { %497 = vst [vmem:[%s1060_s3 + $0x78] sm:$0xff] %v465_v7  ;;  %513 = vst [vmem:[%s1060_s3 + $0xf8] sm:$0xff] %v481_v8 }

// kernel: attention_forward.3
= control target key start
LH: loop header
LB: loop body
LE: loop exit
PB: predicated region body
PF: predicated region fallthrough
CT: control target
= control target key end

     0   :  { %8 = vsyncpa [#allocation4], 0  ;;  %s2193_s0 = inlined_call_operand.vmem [shape: f32[128,256], index: 0, kind: input, shape index: {}]   ;;  %s2194_s1 = inlined_call_operand.hbm [shape: f32[256,768], index: 1, kind: input, shape index: {}]   ;;  %s2195_s2 = inlined_call_operand.vmem [shape: f32[1,768], index: 2, kind: input, shape index: {}]   ;;  %s2196_s3 = inlined_call_operand.vmem [shape: f32[128,768], index: 3, kind: output, shape index: {}]  }
   0x1   :  { %10 = vsyncpa [#allocation4 + $0x1], 0  ;;  %s1657_s12 = smov 0   ;;  %s1659_s13 = smov 0  }
   0x2   :  { %s1661_s14 = smov 0   ;;  %s1663_s15 = smov 0  }
   0x3   :  { %s1665_s16 = smov 0   ;;  %s1667_s17 = smov 0  }
   0x4 LB: > { %s1302_s18 = sadd.s32 4294967295, %s1631_s17   ;;  %s31_s19 = sadd.s32 1, %s1627_s16  ;;  %s1631_s17 = sphi %s1667_s17, %s16_s17   ;;  %s1627_s16 = sphi %s1665_s16, %s2207_s16   ;;  %s1623_s15 = sphi %s1663_s15, %s2206_s15   ;;  %s1619_s14 = sphi %s1661_s14, %s2205_s14   ;;  %s1615_s13 = sphi %s1659_s13, %s2204_s13   ;;  %s1611_s12 = sphi %s1657_s12, %s2203_s12  }
   0x5   : > { %p33_p0 = scmp.ge.s32.totalorder %s31_s19, 2  ;;  %s72_s20 = sadd.s32 1, %s1619_s14 }
   0x6   : > { %p79_p1 = scmp.ne.s32.totalorder %s1619_s14, %s1615_s13  ;;  %p80_p2 = scmp.eq.s32.totalorder %s1631_s17, 0 }
   0x7   : > { %s2209_s19 = smov (%p33_p0, %s31_s19), 0  ;;  %p85_p4 = scmp.ne.s32.totalorder %s1615_s13, %s1611_s12 }
   0x8   : > { %p1693_p3 = por %p80_p2, %p79_p1  ;;  %s68_s22 = ssub.s32 %s1627_s16, %s2209_s19 }
   0x9   : > { %p86_p5 = scmp.eq.s32.totalorder %s1302_s18, 0  ;;  %p70_p6 = scmp.eq.s32.totalorder %s68_s22, 0 }
   0xa   : > { %p137_p7 = scmp.eq.s32.totalorder %s1302_s18, 1  ;;  %p1499_p10 = scmp.lt.s32.totalorder %s1631_s17, 2 }
   0xb   : > { %p1700_p8 = por %p86_p5, %p85_p4  ;;  %s178_s26 = sand.u32 1, %s1619_s14  }
   0xc   : > { %s1705_s24 = scalar_select %p70_p6, %s1619_s14, %s72_s20  }
   0xd   : > { %p1707_p9 = por %p137_p7, %p79_p1  ;;  %s1312_s27 = smul.u32 384, %s1627_s16 }
   0xe   : > { %s1490_s28 = smul.u32 768, %s178_s26  ;;  %p1721_p11 = pnand %p1499_p10, %p1693_p3 }
   0xf   : > { %s2199_s25 = scalar_select %p1707_p9, 1, 0 }
  0x10   : > { %s1717_s4 = scalar_lea.hbm %s2194_s1, %s1312_s27  ;;  %s182_s6 = scalar_lea.vmem [#allocation3], %s1490_s28 }
  0x11   : > { %s192_s7 = sshll.u32 %s182_s6, 4  ;;  %s1728_s8 = scalar_lea.sflag [#allocation4], %s178_s26  ;;  %s1725_s7 = int_to_ptr.vmem [resolvable:$true] %s192_s7 }
  0x12   : > { %s1551_s9 = scalar_lea.hbm %s1717_s4, 12288  ;;  %p1553_p0 = pneg %p1721_p11 }
  0x13   : > { %p1552_p13 = scmp.ne.s32.totalorder %s1717_s4, %s1551_s9  ;;  %s1556_s12 = scalar_lea.hbm %s2194_s1, 24576 }
  0x14   : > { %p1557_p3 = scmp.lt.u32.totalorder %s1717_s4, %s2194_s1  ;;  %p1558_p4 = scmp.lt.u32.totalorder %s1556_s12, %s1551_s9 }
  0x15   : > { %p1554_p1 = pnand %p1553_p0, %p1552_p13  ;;  %p1560_p6 = scmp.lt.u32.totalorder %s1551_s9, %s1717_s4 }
  0x16   : > { %p1559_p5 = por %p1558_p4, %p1557_p3 }
  0x17   : > { %p1555_p2 = pneg %p1554_p1 }
  0x18   : > { %p1561_p7 = por %p1560_p6, %p1559_p5 }
  0x1a   : > { %p1562_p10 = pnand %p1561_p7, %p1555_p2 }
  0x1c   : > { %1565 = shalt.err (!%p1562_p10)
}
  0x1d   : > { %s1566_s21 = scalar_lea.vmem %s1725_s7, 12288  ;;  %s1633_s22 = smov [#allocation3]  }
  0x1e   : > { %p1567_p13 = scmp.ne.s32.totalorder %s1725_s7, %s1566_s21  ;;  %s1571_s26 = sshll.u32 %s1633_s22, 4  ;;  %s1572_s26 = int_to_ptr.vmem [resolvable:$false] %s1571_s26 }
  0x1f   : > { %s1573_s27 = scalar_lea.vmem %s1572_s26, 24576  ;;  %p1574_p9 = scmp.lt.s32.totalorder %s1725_s7, %s1572_s26 }
  0x20   : > { %p1569_p1 = pnand %p1567_p13, %p1553_p0  ;;  %p1575_p3 = scmp.lt.s32.totalorder %s1573_s27, %s1566_s21 }
  0x22   : > { %p1570_p12 = pneg %p1569_p1  ;;  %p1576_p4 = por %p1575_p3, %p1574_p9 }
  0x24   : > { %p1577_p5 = pnand %p1576_p4, %p1570_p12 }
  0x26   : > { %1580 = shalt.err (!%p1577_p5)
}
  0x27   : > { %s1634_s28 = smov 768   ;;  %s1635_s29 = smov 384  }
  0x28   : > { %s1636_s30 = smov 24   ;;  %p208_p0 = scmp.lt.s32.totalorder %s1631_s17, 3 }
  0x29   : > { %1498 = dma.hbm_to_vmem [thread:$0]  (!%p1721_p11), %s1717_s4, 12288, %s1725_s7, %s1728_s8, %s1634_s28, %s1635_s29, %s1636_s30  }
  0x2a   : > { %p2201_p2 = scmp.ge.s32.totalorder %s1631_s17, 1 }
  0x2c   : > { %p209_p6 = pnand %p2201_p2, %p208_p0 }
  0x2d   : > { %s1760_s6 = sand.u32 (!%p209_p6), 1, %s1615_s13  }
  0x2e   : > { %212 = sbr.rel (%p209_p6) target bundleno = 405 (0x195), region = 32  ;;  %s215_s10 = scalar_lea.sflag (!%p209_p6), [#allocation4], %s1760_s6 }
  0x2f   : > { %s1491_s9 = smul.u32 (!%p209_p6), 768, %s1760_s6 }
  0x31   : > { %s1764_s11 = scalar_lea.vmem (!%p209_p6), [#allocation3], %s1491_s9 }
  0x35   : > { %1606 = dma.done.wait (%p1700_p8), %s215_s10, 12288  }
  0x36   : > { %1608 = vsyncadd (%p1700_p8), %s215_s10, 4294955008  ;;  %v408_v0 = vld [vmem:[%s1764_s11 + $0x8] sm:$0xff]  ;;  %v411_v1 = vld [vmem:[%s1764_s11 + $0x20] sm:$0xff]  ;;  %s268_s26 = smul.u32 3, %s1623_s15  ;;  %p2202_p9 = scmp.ne.s32.totalorder %s2199_s25, 0 }
  0x37   : > { %v407_v2 = vld [vmem:[%s1764_s11] sm:$0xff]  ;;  %v1394_v3 = vpack.c.bf16 %v411_v1, %v408_v0  ;;  %v410_v4 = vld [vmem:[%s1764_s11 + $0x18] sm:$0xff]  ;;  %v417_v6 = vld [vmem:[%s1764_s11 + $0x50] sm:$0xff]  ;;  %s1492_s30 = smul.u32 384, %s1760_s6 }
  0x38   : > { %v414_v5 = vld [vmem:[%s1764_s11 + $0x38] sm:$0xff]  ;;  %v1396_v7 = vpack.c.bf16 %v410_v4, %v407_v2  ;;  %v413_v9 = vld [vmem:[%s1764_s11 + $0x30] sm:$0xff]  ;;  %v416_v10 = vld [vmem:[%s1764_s11 + $0x48] sm:$0xff]  ;;  %p269_p8 = scmp.lt.s32.totalorder %s268_s26, 5  ;;  %s1313_s6 = smul.u32 (%p2202_p9), 24, %s1623_s15 }
  0x39   : > { %v1398_v8 = vpack.c.bf16 %v417_v6, %v414_v5  ;;  %v420_v11 = vld [vmem:[%s1764_s11 + $0x68] sm:$0xff]  ;;  %1395 = vmatprep.subr.bf16.mxu0 %v1394_v3  ;;  %v423_v12 = vld [vmem:[%s1764_s11 + $0x80] sm:$0xff]  ;;  %v1400_v13 = vpack.c.bf16 %v416_v10, %v413_v9  ;;  %v422_v16 = vld [vmem:[%s1764_s11 + $0x78] sm:$0xff]  ;;  %s1970_s9 = scalar_lea.vmem [#allocation5], %s1492_s30 }
  0x3a   : > { %1397 = vmatpush1.bf16.msra.mxu0 %v1396_v7  ;;  %v1402_v14 = vpack.c.bf16 %v423_v12, %v420_v11  ;;  %v419_v15 = vld [vmem:[%s1764_s11 + $0x60] sm:$0xff]  ;;  %v426_v17 = vld [vmem:[%s1764_s11 + $0x98] sm:$0xff]  ;;  %v429_v18 = vld [vmem:[%s1764_s11 + $0xb0] sm:$0xff]  ;;  %s2211_s26 = smov (!%p269_p8, %s268_s26), 5  ;;  %s2083_s23 = scalar_lea.vmem (%p2202_p9), %s2196_s3, %s1313_s6 }
  0x3b   : > { %1399 = vmatprep.subr.bf16.mxu0 %v1398_v8  ;;  %v1404_v19 = vpack.c.bf16 %v422_v16, %v419_v15  ;;  %v1406_v20 = vpack.c.bf16 %v429_v18, %v426_v17  ;;  %v425_v21 = vld [vmem:[%s1764_s11 + $0x90] sm:$0xff]  ;;  %v428_v22 = vld [vmem:[%s1764_s11 + $0xa8] sm:$0xff]  ;;  %v435_v24 = vld [vmem:[%s1764_s11 + $0xe0] sm:$0xff]  ;;  %s271_s29 = scalar_lea.vmem %s2195_s2, %s2211_s26 }
  0x3c   : > { %v432_v23 = vld [vmem:[%s1764_s11 + $0xc8] sm:$0xff]  ;;  %v457_v25 = vld [vmem:[%s1764_s11 + $0x190] sm:$0xff]  ;;  %v1408_v29 = vpack.c.bf16 %v428_v22, %v425_v21  ;;  %v431_v30 = vld [vmem:[%s1764_s11 + $0xc0] sm:$0xff] }
  0x3d   : > { %v460_v26 = vld [vmem:[%s1764_s11 + $0x1a8] sm:$0xff]  ;;  %v409_v27 = vld [vmem:[%s1764_s11 + $0x10] sm:$0xff]  ;;  %v434_v31 = vld [vmem:[%s1764_s11 + $0xd8] sm:$0xff]  ;;  %v1410_v34 = vpack.c.bf16 %v435_v24, %v432_v23 }
  0x3e   : > { %1401 = vmatpush1.bf16.msra.mxu0 %v1400_v13  ;;  %v412_v28 = vld [vmem:[%s1764_s11 + $0x28] sm:$0xff]  ;;  %v1458_v32 = vpack.c.bf16 %v460_v26, %v457_v25  ;;  %v438_v35 = vld [vmem:[%s1764_s11 + $0xf8] sm:$0xff]  ;;  %v463_v36 = vld [vmem:[%s1764_s11 + $0x1c0] sm:$0xff]  ;;  %v1412_v43 = vpack.c.bf16 %v434_v31, %v431_v30 }
  0x3f   : > { %1403 = vmatprep.subr.bf16.mxu0 %v1402_v14  ;;  %v1460_v33 = vpack.c.bf16 %v412_v28, %v409_v27  ;;  %v466_v37 = vld [vmem:[%s1764_s11 + $0x1d8] sm:$0xff]  ;;  %v441_v38 = vld [vmem:[%s1764_s11 + $0x110] sm:$0xff]  ;;  %v415_v40 = vld [vmem:[%s1764_s11 + $0x40] sm:$0xff] }
  0x40   : > { %1459 = vmatprep.subr.bf16.mxu1 %v1458_v32  ;;  %v1462_v39 = vpack.c.bf16 %v466_v37, %v463_v36  ;;  %v418_v41 = vld [vmem:[%s1764_s11 + $0x58] sm:$0xff]  ;;  %v469_v44 = vld [vmem:[%s1764_s11 + $0x1f0] sm:$0xff]  ;;  %v472_v45 = vld [vmem:[%s1764_s11 + $0x208] sm:$0xff]  ;;  %v1414_v47 = vpack.c.bf16 %v441_v38, %v438_v35 }
  0x41   : > { %1461 = vmatpush3.bf16.msra.mxu1 %v1460_v33  ;;  %v1464_v42 = vpack.c.bf16 %v418_v41, %v415_v40  ;;  %v421_v46 = vld [vmem:[%s1764_s11 + $0x70] sm:$0xff]  ;;  %v440_v49 = vld [vmem:[%s1764_s11 + $0x108] sm:$0xff]  ;;  %v1466_v50 = vpack.c.bf16 %v472_v45, %v469_v44  ;;  %v447_v53 = vld [vmem:[%s1764_s11 + $0x140] sm:$0xff] }
  0x42   : > { %1405 = vmatpush1.bf16.msra.mxu0 %v1404_v19  ;;  %1463 = vmatprep.subr.bf16.mxu1 %v1462_v39  ;;  %v437_v48 = vld [vmem:[%s1764_s11 + $0xf0] sm:$0xff]  ;;  %v424_v51 = vld [vmem:[%s1764_s11 + $0x88] sm:$0xff]  ;;  %v475_v54 = vld [vmem:[%s1764_s11 + $0x220] sm:$0xff] }
  0x43   : > { %1407 = vmatprep.subr.bf16.mxu0 %v1406_v20  ;;  %v444_v52 = vld [vmem:[%s1764_s11 + $0x128] sm:$0xff]  ;;  %v1468_v55 = vpack.c.bf16 %v424_v51, %v421_v46  ;;  %v478_v56 = vld [vmem:[%s1764_s11 + $0x238] sm:$0xff]  ;;  %v1416_v57 = vpack.c.bf16 %v440_v49, %v437_v48  ;;  %v443_v58 = vld [vmem:[%s1764_s11 + $0x120] sm:$0xff] }
  0x44   : > { %v1470_v59 = vpack.c.bf16 %v478_v56, %v475_v54  ;;  %v427_v60 = vld [vmem:[%s1764_s11 + $0xa0] sm:$0xff]  ;;  %v430_v61 = vld [vmem:[%s1764_s11 + $0xb8] sm:$0xff]  ;;  %v1418_v62 = vpack.c.bf16 %v447_v53, %v444_v52  ;;  %v481_v0 = vld [vmem:[%s1764_s11 + $0x250] sm:$0xff] }
  0x45   : > { %1465 = vmatpush3.bf16.msra.mxu1 %v1464_v42  ;;  %v446_v63 = vld [vmem:[%s1764_s11 + $0x138] sm:$0xff]  ;;  %v484_v1 = vld [vmem:[%s1764_s11 + $0x268] sm:$0xff]  ;;  %v453_v3 = vld [vmem:[%s1764_s11 + $0x170] sm:$0xff]  ;;  %v1472_v4 = vpack.c.bf16 %v430_v61, %v427_v60 }
  0x46   : > { %1409 = vmatpush1.bf16.msra.mxu0 %v1408_v29  ;;  %1467 = vmatprep.subr.bf16.mxu1 %v1466_v50  ;;  %v450_v2 = vld [vmem:[%s1764_s11 + $0x158] sm:$0xff]  ;;  %v1420_v5 = vpack.c.bf16 %v446_v63, %v443_v58  ;;  %v449_v6 = vld [vmem:[%s1764_s11 + $0x150] sm:$0xff]  ;;  %v1474_v7 = vpack.c.bf16 %v484_v1, %v481_v0  ;;  %v436_v9 = vld [vmem:[%s1764_s11 + $0xe8] sm:$0xff] }
  0x47   : > { %1411 = vmatprep.subr.bf16.mxu0 %v1410_v34  ;;  %v433_v8 = vld [vmem:[%s1764_s11 + $0xd0] sm:$0xff]  ;;  %v1422_v10 = vpack.c.bf16 %v453_v3, %v450_v2  ;;  %v452_v11 = vld [vmem:[%s1764_s11 + $0x168] sm:$0xff]  ;;  %v487_v12 = vld [vmem:[%s1764_s11 + $0x280] sm:$0xff] }
  0x48   : > { %v490_v13 = vld [vmem:[%s1764_s11 + $0x298] sm:$0xff]  ;;  %v456_v14 = vld [vmem:[%s1764_s11 + $0x188] sm:$0xff]  ;;  %v459_v15 = vld [vmem:[%s1764_s11 + $0x1a0] sm:$0xff]  ;;  %v1476_v16 = vpack.c.bf16 %v436_v9, %v433_v8  ;;  %v1424_v17 = vpack.c.bf16 %v452_v11, %v449_v6 }
  0x49   : > { %1469 = vmatpush3.bf16.msra.mxu1 %v1468_v55  ;;  %v455_v18 = vld [vmem:[%s1764_s11 + $0x180] sm:$0xff]  ;;  %v1478_v19 = vpack.c.bf16 %v490_v13, %v487_v12  ;;  %v442_v21 = vld [vmem:[%s1764_s11 + $0x118] sm:$0xff]  ;;  %v1426_v22 = vpack.c.bf16 %v459_v15, %v456_v14  ;;  %v493_v24 = vld [vmem:[%s1764_s11 + $0x2b0] sm:$0xff] }
  0x4a   : > { %1413 = vmatpush1.bf16.msra.mxu0 %v1412_v43  ;;  %1471 = vmatprep.subr.bf16.mxu1 %v1470_v59  ;;  %v439_v20 = vld [vmem:[%s1764_s11 + $0x100] sm:$0xff]  ;;  %v458_v23 = vld [vmem:[%s1764_s11 + $0x198] sm:$0xff]  ;;  %v496_v25 = vld [vmem:[%s1764_s11 + $0x2c8] sm:$0xff] }
  0x4b   : > { %1415 = vmatprep.subr.bf16.mxu0 %v1414_v47  ;;  %v462_v26 = vld [vmem:[%s1764_s11 + $0x1b8] sm:$0xff]  ;;  %v465_v27 = vld [vmem:[%s1764_s11 + $0x1d0] sm:$0xff]  ;;  %v1480_v28 = vpack.c.bf16 %v442_v21, %v439_v20  ;;  %v376_v29 = vld [vmem:[%s2193_s0 + $0x8] sm:$0xff]  ;;  %v1428_v30 = vpack.c.bf16 %v458_v23, %v455_v18  ;;  %v1482_v32 = vpack.c.bf16 %v496_v25, %v493_v24 }
  0x4c   : > { %v461_v31 = vld [vmem:[%s1764_s11 + $0x1b0] sm:$0xff]  ;;  %v448_v34 = vld [vmem:[%s1764_s11 + $0x148] sm:$0xff]  ;;  %v1430_v35 = vpack.c.bf16 %v465_v27, %v462_v26  ;;  %v499_v37 = vld [vmem:[%s1764_s11 + $0x2e0] sm:$0xff]  ;;  %728 = vmatprep.mubr.f32.mxu1 %v376_v29  ;;  %567 = vmatprep.mubr.f32.mxu0 %v376_v29 }
  0x4d   : > { %1473 = vmatpush3.bf16.msra.mxu1 %v1472_v4  ;;  %v445_v33 = vld [vmem:[%s1764_s11 + $0x130] sm:$0xff]  ;;  %v464_v36 = vld [vmem:[%s1764_s11 + $0x1c8] sm:$0xff]  ;;  %v502_v38 = vld [vmem:[%s1764_s11 + $0x2f8] sm:$0xff] }
  0x4e   : > { %1417 = vmatpush1.bf16.msra.mxu0 %v1416_v57  ;;  %1475 = vmatprep.subr.bf16.mxu1 %v1474_v7  ;;  %v468_v39 = vld [vmem:[%s1764_s11 + $0x1e8] sm:$0xff]  ;;  %v471_v40 = vld [vmem:[%s1764_s11 + $0x200] sm:$0xff]  ;;  %v1484_v41 = vpack.c.bf16 %v448_v34, %v445_v33  ;;  %v1432_v42 = vpack.c.bf16 %v464_v36, %v461_v31  ;;  %v1486_v43 = vpack.c.bf16 %v502_v38, %v499_v37  ;;  %v454_v45 = vld [vmem:[%s1764_s11 + $0x178] sm:$0xff] }
  0x4f   : > { %1419 = vmatprep.subr.bf16.mxu0 %v1418_v62  ;;  %v451_v44 = vld [vmem:[%s1764_s11 + $0x160] sm:$0xff]  ;;  %v1434_v46 = vpack.c.bf16 %v471_v40, %v468_v39  ;;  %v470_v48 = vld [vmem:[%s1764_s11 + $0x1f8] sm:$0xff]  ;;  %v477_v50 = vld [vmem:[%s1764_s11 + $0x230] sm:$0xff] }
  0x50   : > { %v467_v47 = vld [vmem:[%s1764_s11 + $0x1e0] sm:$0xff]  ;;  %v474_v49 = vld [vmem:[%s1764_s11 + $0x218] sm:$0xff]  ;;  %v1488_v51 = vpack.c.bf16 %v454_v45, %v451_v44  ;;  %v473_v54 = vld [vmem:[%s1764_s11 + $0x210] sm:$0xff] }
  0x51   : > { %1477 = vmatpush3.bf16.msra.mxu1 %v1476_v16  ;;  %v1436_v52 = vpack.c.bf16 %v470_v48, %v467_v47  ;;  %v1438_v53 = vpack.c.bf16 %v477_v50, %v474_v49  ;;  %v476_v55 = vld [vmem:[%s1764_s11 + $0x228] sm:$0xff]  ;;  %v483_v57 = vld [vmem:[%s1764_s11 + $0x260] sm:$0xff]  ;;  %v378_v60 = vld [vmem:[%s2193_s0 + $0x18] sm:$0xff]  ;;  %v958_v48 = vlaneseq }
  0x52   : > { %1421 = vmatpush1.bf16.msra.mxu0 %v1420_v5  ;;  %1479 = vmatprep.subr.bf16.mxu1 %v1478_v19  ;;  %v480_v56 = vld [vmem:[%s1764_s11 + $0x248] sm:$0xff]  ;;  %v375_v58 = vld [vmem:[%s2193_s0] sm:$0xff]  ;;  %v1440_v59 = vpack.c.bf16 %v476_v55, %v473_v54  ;;  %v482_v63 = vld [vmem:[%s1764_s11 + $0x258] sm:$0xff] }
  0x53   : > { %1423 = vmatprep.subr.bf16.mxu0 %v1422_v10  ;;  %v1442_v61 = vpack.c.bf16 %v483_v57, %v480_v56  ;;  %v479_v62 = vld [vmem:[%s1764_s11 + $0x240] sm:$0xff]  ;;  %v486_v0 = vld [vmem:[%s1764_s11 + $0x278] sm:$0xff]  ;;  %v489_v1 = vld [vmem:[%s1764_s11 + $0x290] sm:$0xff]  ;;  %v959_v49 = vshrl.u32 %v958_v48, 7 }
  0x54   : > { %v377_v2 = vld [vmem:[%s2193_s0 + $0x10] sm:$0xff]  ;;  %v1444_v3 = vpack.c.bf16 %v482_v63, %v479_v62  ;;  %v380_v4 = vld [vmem:[%s2193_s0 + $0x28] sm:$0xff]  ;;  %v1446_v5 = vpack.c.bf16 %v489_v1, %v486_v0  ;;  %v495_v9 = vld [vmem:[%s1764_s11 + $0x2c0] sm:$0xff] }
  0x55   : > { %1481 = vmatpush3.bf16.msra.mxu1 %v1480_v28  ;;  %v485_v6 = vld [vmem:[%s1764_s11 + $0x270] sm:$0xff]  ;;  %v488_v7 = vld [vmem:[%s1764_s11 + $0x288] sm:$0xff]  ;;  %v379_v10 = vld [vmem:[%s2193_s0 + $0x20] sm:$0xff]  ;;  %v968_v50 = vsub.s32 2, %v959_v49 }
  0x56   : > { %1425 = vmatpush1.bf16.msra.mxu0 %v1424_v17  ;;  %1483 = vmatprep.subr.bf16.mxu1 %v1482_v32  ;;  %v492_v8 = vld [vmem:[%s1764_s11 + $0x2a8] sm:$0xff]  ;;  %v1448_v11 = vpack.c.bf16 %v488_v7, %v485_v6  ;;  %v382_v12 = vld [vmem:[%s2193_s0 + $0x38] sm:$0xff]  ;;  %v491_v14 = vld [vmem:[%s1764_s11 + $0x2a0] sm:$0xff] }
  0x57   : > { %1427 = vmatprep.subr.bf16.mxu0 %v1426_v22  ;;  %v1450_v13 = vpack.c.bf16 %v495_v9, %v492_v8  ;;  %v494_v15 = vld [vmem:[%s1764_s11 + $0x2b8] sm:$0xff]  ;;  %v501_v17 = vld [vmem:[%s1764_s11 + $0x2f0] sm:$0xff]  ;;  %v384_v20 = vld [vmem:[%s2193_s0 + $0x48] sm:$0xff] }
  0x58   : > { %v498_v16 = vld [vmem:[%s1764_s11 + $0x2d8] sm:$0xff]  ;;  %v381_v18 = vld [vmem:[%s2193_s0 + $0x30] sm:$0xff]  ;;  %v1452_v19 = vpack.c.bf16 %v494_v15, %v491_v14  ;;  %v500_v23 = vld [vmem:[%s1764_s11 + $0x2e8] sm:$0xff] }
  0x59   : > { %1485 = vmatpush3.bf16.msra.mxu1 %v1484_v41  ;;  %v1454_v21 = vpack.c.bf16 %v501_v17, %v498_v16  ;;  %v497_v22 = vld [vmem:[%s1764_s11 + $0x2d0] sm:$0xff]  ;;  %v383_v24 = vld [vmem:[%s2193_s0 + $0x40] sm:$0xff]  ;;  %v386_v26 = vld [vmem:[%s2193_s0 + $0x58] sm:$0xff] }
  0x5a   : > { %1429 = vmatpush1.bf16.msra.mxu0 %v1428_v30  ;;  %1487 = vmatprep.subr.bf16.mxu1 %v1486_v43  ;;  %v1456_v25 = vpack.c.bf16 %v500_v23, %v497_v22  ;;  %v385_v27 = vld [vmem:[%s2193_s0 + $0x50] sm:$0xff]  ;;  %v388_v28 = vld [vmem:[%s2193_s0 + $0x68] sm:$0xff]  ;;  %v387_v29 = vld [vmem:[%s2193_s0 + $0x60] sm:$0xff] }
  0x5b   : > { %1431 = vmatprep.subr.bf16.mxu0 %v1430_v35  ;;  %v390_v30 = vld [vmem:[%s2193_s0 + $0x78] sm:$0xff]  ;;  %v389_v31 = vld [vmem:[%s2193_s0 + $0x70] sm:$0xff]  ;;  %v392_v32 = vld [vmem:[%s2193_s0 + $0x88] sm:$0xff] }
  0x5c   : > { %v391_v33 = vld [vmem:[%s2193_s0 + $0x80] sm:$0xff]  ;;  %v394_v34 = vld [vmem:[%s2193_s0 + $0x98] sm:$0xff]  ;;  %v393_v35 = vld [vmem:[%s2193_s0 + $0x90] sm:$0xff] }
  0x5d   : > { %1489 = vmatpush3.bf16.msra.mxu1 %v1488_v51  ;;  %v396_v36 = vld [vmem:[%s2193_s0 + $0xa8] sm:$0xff]  ;;  %v395_v37 = vld [vmem:[%s2193_s0 + $0xa0] sm:$0xff]  ;;  %v398_v38 = vld [vmem:[%s2193_s0 + $0xb8] sm:$0xff] }
  0x5e   : > { %1433 = vmatpush1.bf16.msra.mxu0 %v1432_v42  ;;  %v397_v39 = vld [vmem:[%s2193_s0 + $0xb0] sm:$0xff]  ;;  %v400_v40 = vld [vmem:[%s2193_s0 + $0xc8] sm:$0xff]  ;;  %v399_v41 = vld [vmem:[%s2193_s0 + $0xc0] sm:$0xff] }
  0x5f   : > { %1435 = vmatprep.subr.bf16.mxu0 %v1434_v46  ;;  %v402_v42 = vld [vmem:[%s2193_s0 + $0xd8] sm:$0xff]  ;;  %v401_v43 = vld [vmem:[%s2193_s0 + $0xd0] sm:$0xff]  ;;  %v404_v44 = vld [vmem:[%s2193_s0 + $0xe8] sm:$0xff] }
  0x60   : > { %729 = vmatmul.mubr.f32.vlgmr.msra.gmra.mrb[0].mxu1 %v375_v58  ;;  %v403_v45 = vld [vmem:[%s2193_s0 + $0xe0] sm:$0xff]  ;;  %v406_v46 = vld [vmem:[%s2193_s0 + $0xf8] sm:$0xff]  ;;  %v405_v47 = vld [vmem:[%s2193_s0 + $0xf0] sm:$0xff] }
  0x61   : > { %733 = vmatprep.mubr.f32.mxu1 %v378_v60  ;;  %v956_v51 = vld [vmem:[%s271_s29] sm:$0x7] }
  0x62   : > { %1437 = vmatpush1.bf16.msra.mxu0 %v1436_v52 }
  0x63   : > { %1439 = vmatprep.subr.bf16.mxu0 %v1438_v53  ;;  %v1967_v53 = vrot.slane %v956_v51, %v968_v50 }
  0x64   : > { %734 = vmatmul.mubr.f32.gmra.mrb[2].mxu1 %v377_v2 }
  0x65   : > { %738 = vmatprep.mubr.f32.mxu1 %v380_v4 }
  0x66   : > { %1441 = vmatpush1.bf16.msra.mxu0 %v1440_v59 }
  0x67   : > { %1443 = vmatprep.subr.bf16.mxu0 %v1442_v61 }
  0x68   : > { %739 = vmatmul.mubr.f32.gmra.mrb[4].mxu1 %v379_v10 }
  0x69   : > { %743 = vmatprep.mubr.f32.mxu1 %v382_v12 }
  0x6a   : > { %1445 = vmatpush1.bf16.msra.mxu0 %v1444_v3  ;;  %v960_v3 = vsub.s32 0, %v959_v49 }
  0x6b   : > { %1447 = vmatprep.subr.bf16.mxu0 %v1446_v5  ;;  %v964_v5 = vsub.s32 1, %v959_v49 }
  0x6c   : > { %744 = vmatmul.mubr.f32.gmra.mrb[6].mxu1 %v381_v18  ;;  %v1978_v9 = vrot.slane %v956_v51, %v960_v3 }
  0x6d   : > { %748 = vmatprep.mubr.f32.mxu1 %v384_v20 }
  0x6e   : > { %1449 = vmatpush1.bf16.msra.mxu0 %v1448_v11  ;;  %v1981_v11 = vrot.slane %v956_v51, %v964_v5 }
  0x6f   : > { %1451 = vmatprep.subr.bf16.mxu0 %v1450_v13 }
  0x70   : > { %749 = vmatmul.mubr.f32.gmra.mrb[8].mxu1 %v383_v24 }
  0x71   : > { %753 = vmatprep.mubr.f32.mxu1 %v386_v26 }
  0x72   : > { %1453 = vmatpush1.bf16.msra.mxu0 %v1452_v19 }
  0x73   : > { %1455 = vmatprep.subr.bf16.mxu0 %v1454_v21 }
  0x74   : > { %754 = vmatmul.mubr.f32.gmra.mrb[10].mxu1 %v385_v27 }
  0x75   : > { %758 = vmatprep.mubr.f32.mxu1 %v388_v28 }
  0x76   : > { %1457 = vmatpush1.bf16.msra.mxu0 %v1456_v25 }
  0x78   : > { %759 = vmatmul.mubr.f32.gmra.mrb[12].mxu1 %v387_v29 }
  0x79   : > { %568 = vmatmul.mubr.f32.vlgmr.msra.gmra.mrb[0].mxu0 %v375_v58  ;;  %763 = vmatprep.mubr.f32.mxu1 %v390_v30 }
  0x7a   : > { %573 = vmatprep.mubr.f32.mxu0 %v378_v60 }
  0x7c   : > { %764 = vmatmul.mubr.f32.gmra.mrb[14].mxu1 %v389_v31 }
  0x7d   : > { %574 = vmatmul.mubr.f32.gmra.mrb[2].mxu0 %v377_v2  ;;  %768 = vmatprep.mubr.f32.mxu1 %v392_v32 }
  0x7e   : > { %579 = vmatprep.mubr.f32.mxu0 %v380_v4 }
  0x80   : > { %769 = vmatmul.mubr.f32.gmra.mrb[16].mxu1 %v391_v33 }
  0x81   : > { %580 = vmatmul.mubr.f32.gmra.mrb[4].mxu0 %v379_v10  ;;  %773 = vmatprep.mubr.f32.mxu1 %v394_v34 }
  0x82   : > { %585 = vmatprep.mubr.f32.mxu0 %v382_v12 }
  0x84   : > { %774 = vmatmul.mubr.f32.gmra.mrb[18].mxu1 %v393_v35 }
  0x85   : > { %586 = vmatmul.mubr.f32.gmra.mrb[6].mxu0 %v381_v18  ;;  %778 = vmatprep.mubr.f32.mxu1 %v396_v36 }
  0x86   : > { %591 = vmatprep.mubr.f32.mxu0 %v384_v20 }
  0x88   : > { %779 = vmatmul.mubr.f32.gmra.mrb[20].mxu1 %v395_v37 }
  0x89   : > { %592 = vmatmul.mubr.f32.gmra.mrb[8].mxu0 %v383_v24  ;;  %783 = vmatprep.mubr.f32.mxu1 %v398_v38 }
  0x8a   : > { %597 = vmatprep.mubr.f32.mxu0 %v386_v26 }
  0x8c   : > { %784 = vmatmul.mubr.f32.gmra.mrb[22].mxu1 %v397_v39 }
  0x8d   : > { %598 = vmatmul.mubr.f32.gmra.mrb[10].mxu0 %v385_v27  ;;  %788 = vmatprep.mubr.f32.mxu1 %v400_v40 }
  0x8e   : > { %603 = vmatprep.mubr.f32.mxu0 %v388_v28 }
  0x90   : > { %789 = vmatmul.mubr.f32.gmra.mrb[24].mxu1 %v399_v41 }
  0x91   : > { %604 = vmatmul.mubr.f32.gmra.mrb[12].mxu0 %v387_v29  ;;  %793 = vmatprep.mubr.f32.mxu1 %v402_v42 }
  0x92   : > { %609 = vmatprep.mubr.f32.mxu0 %v390_v30 }
  0x94   : > { %794 = vmatmul.mubr.f32.gmra.mrb[26].mxu1 %v401_v43 }
  0x95   : > { %610 = vmatmul.mubr.f32.gmra.mrb[14].mxu0 %v389_v31  ;;  %798 = vmatprep.mubr.f32.mxu1 %v404_v44 }
  0x96   : > { %615 = vmatprep.mubr.f32.mxu0 %v392_v32 }
  0x98   : > { %799 = vmatmul.mubr.f32.gmra.mrb[28].mxu1 %v403_v45 }
  0x99   : > { %616 = vmatmul.mubr.f32.gmra.mrb[16].mxu0 %v391_v33  ;;  %803 = vmatprep.mubr.f32.mxu1 %v406_v46 }
  0x9a   : > { %621 = vmatprep.mubr.f32.mxu0 %v394_v34 }
  0x9c   : > { %804 = vmatmul.mubr.f32.gmra.mrb[30].mxu1 %v405_v47 }
  0x9d   : > { %622 = vmatmul.mubr.f32.gmra.mrb[18].mxu0 %v393_v35 }
  0x9e   : > { %627 = vmatprep.mubr.f32.mxu0 %v396_v36 }
  0xa1   : > { %628 = vmatmul.mubr.f32.gmra.mrb[20].mxu0 %v395_v37 }
  0xa2   : > { %633 = vmatprep.mubr.f32.mxu0 %v398_v38 }
  0xa5   : > { %634 = vmatmul.mubr.f32.gmra.mrb[22].mxu0 %v397_v39 }
  0xa6   : > { %639 = vmatprep.mubr.f32.mxu0 %v400_v40 }
  0xa9   : > { %640 = vmatmul.mubr.f32.gmra.mrb[24].mxu0 %v399_v41 }
  0xaa   : > { %645 = vmatprep.mubr.f32.mxu0 %v402_v42 }
  0xad   : > { %646 = vmatmul.mubr.f32.gmra.mrb[26].mxu0 %v401_v43 }
  0xae   : > { %651 = vmatprep.mubr.f32.mxu0 %v404_v44 }
  0xb1   : > { %652 = vmatmul.mubr.f32.gmra.mrb[28].mxu0 %v403_v45 }
  0xb2   : > { %657 = vmatprep.mubr.f32.mxu0 %v406_v46 }
  0xb5   : > { %658 = vmatmul.mubr.f32.gmra.mrb[30].mxu0 %v405_v47 }
 0x133   : > { %v1346_v52 = vpop.f32.mrb[0].mxu1 }
 0x134   : > { %v1347_v54 = vpop.f32.mrb[1].mxu1 }
 0x135   : > { %v1348_v55 = vadd.f32 %v1347_v54, %v1346_v52 }
 0x137   : > { %v975_v56 = vadd.f32 %v1348_v55, %v1967_v53  ;;  %v1349_v57 = vpop.f32.mrb[2].mxu1 }
 0x138   : > { %v1350_v58 = vpop.f32.mrb[3].mxu1 }
 0x139   : > { %1023 = vst [vmem:[%s1970_s9 + $0x10] sm:$0xff] %v975_v56  ;;  %v1351_v59 = vadd.f32 %v1350_v58, %v1349_v57 }
 0x13b   : > { %v978_v60 = vadd.f32 %v1351_v59, %v1967_v53  ;;  %v1352_v61 = vpop.f32.mrb[4].mxu1 }
 0x13c   : > { %v1353_v62 = vpop.f32.mrb[5].mxu1 }
 0x13d   : > { %1026 = vst [vmem:[%s1970_s9 + $0x28] sm:$0xff] %v978_v60  ;;  %v1354_v63 = vadd.f32 %v1353_v62, %v1352_v61 }
 0x13f   : > { %v981_v0 = vadd.f32 %v1354_v63, %v1967_v53  ;;  %v1355_v1 = vpop.f32.mrb[6].mxu1 }
 0x140   : > { %v1356_v2 = vpop.f32.mrb[7].mxu1 }
 0x141   : > { %1029 = vst [vmem:[%s1970_s9 + $0x40] sm:$0xff] %v981_v0  ;;  %v1357_v4 = vadd.f32 %v1356_v2, %v1355_v1 }
 0x143   : > { %v984_v6 = vadd.f32 %v1357_v4, %v1967_v53  ;;  %v1358_v7 = vpop.f32.mrb[8].mxu1 }
 0x144   : > { %v1359_v8 = vpop.f32.mrb[9].mxu1 }
 0x145   : > { %1032 = vst [vmem:[%s1970_s9 + $0x58] sm:$0xff] %v984_v6  ;;  %v1360_v10 = vadd.f32 %v1359_v8, %v1358_v7 }
 0x147   : > { %v987_v12 = vadd.f32 %v1360_v10, %v1967_v53  ;;  %v1361_v13 = vpop.f32.mrb[10].mxu1 }
 0x148   : > { %v1362_v15 = vpop.f32.mrb[11].mxu1 }
 0x149   : > { %1035 = vst [vmem:[%s1970_s9 + $0x70] sm:$0xff] %v987_v12  ;;  %v1363_v18 = vadd.f32 %v1362_v15, %v1361_v13 }
 0x14b   : > { %v990_v20 = vadd.f32 %v1363_v18, %v1967_v53  ;;  %v1364_v21 = vpop.f32.mrb[12].mxu1 }
 0x14c   : > { %v569_v14 = vpop.f32.mrb[0].mxu0  ;;  %v1365_v23 = vpop.f32.mrb[13].mxu1 }
 0x14d   : > { %v973_v16 = vadd.f32 %v1978_v9, %v569_v14  ;;  %v571_v17 = vpop.f32.mrb[1].mxu0  ;;  %1038 = vst [vmem:[%s1970_s9 + $0x88] sm:$0xff] %v990_v20  ;;  %v1366_v26 = vadd.f32 %v1365_v23, %v1364_v21 }
 0x14e   : > { %v974_v19 = vadd.f32 %v1981_v11, %v571_v17 }
 0x14f   : > { %1021 = vst [vmem:[%s1970_s9] sm:$0xff] %v973_v16  ;;  %v993_v28 = vadd.f32 %v1366_v26, %v1967_v53  ;;  %v1367_v29 = vpop.f32.mrb[14].mxu1 }
 0x150   : > { %1022 = vst [vmem:[%s1970_s9 + $0x8] sm:$0xff] %v974_v19  ;;  %v575_v22 = vpop.f32.mrb[2].mxu0  ;;  %v1368_v31 = vpop.f32.mrb[15].mxu1 }
 0x151   : > { %v976_v24 = vadd.f32 %v1978_v9, %v575_v22  ;;  %v577_v25 = vpop.f32.mrb[3].mxu0  ;;  %1041 = vst [vmem:[%s1970_s9 + $0xa0] sm:$0xff] %v993_v28  ;;  %v1369_v34 = vadd.f32 %v1368_v31, %v1367_v29 }
 0x152   : > { %v977_v27 = vadd.f32 %v1981_v11, %v577_v25 }
 0x153   : > { %1024 = vst [vmem:[%s1970_s9 + $0x18] sm:$0xff] %v976_v24  ;;  %v996_v36 = vadd.f32 %v1369_v34, %v1967_v53  ;;  %v1370_v37 = vpop.f32.mrb[16].mxu1 }
 0x154   : > { %1025 = vst [vmem:[%s1970_s9 + $0x20] sm:$0xff] %v977_v27  ;;  %v581_v30 = vpop.f32.mrb[4].mxu0  ;;  %v1371_v39 = vpop.f32.mrb[17].mxu1 }
 0x155   : > { %v979_v32 = vadd.f32 %v1978_v9, %v581_v30  ;;  %v583_v33 = vpop.f32.mrb[5].mxu0  ;;  %1044 = vst [vmem:[%s1970_s9 + $0xb8] sm:$0xff] %v996_v36  ;;  %v1372_v42 = vadd.f32 %v1371_v39, %v1370_v37 }
 0x156   : > { %v980_v35 = vadd.f32 %v1981_v11, %v583_v33 }
 0x157   : > { %1027 = vst [vmem:[%s1970_s9 + $0x30] sm:$0xff] %v979_v32  ;;  %v999_v44 = vadd.f32 %v1372_v42, %v1967_v53  ;;  %v1373_v45 = vpop.f32.mrb[18].mxu1 }
 0x158   : > { %1028 = vst [vmem:[%s1970_s9 + $0x38] sm:$0xff] %v980_v35  ;;  %v587_v38 = vpop.f32.mrb[6].mxu0  ;;  %v1374_v47 = vpop.f32.mrb[19].mxu1 }
 0x159   : > { %v982_v40 = vadd.f32 %v1978_v9, %v587_v38  ;;  %v589_v41 = vpop.f32.mrb[7].mxu0  ;;  %1047 = vst [vmem:[%s1970_s9 + $0xd0] sm:$0xff] %v999_v44  ;;  %v1375_v50 = vadd.f32 %v1374_v47, %v1373_v45 }
 0x15a   : > { %v983_v43 = vadd.f32 %v1981_v11, %v589_v41 }
 0x15b   : > { %1030 = vst [vmem:[%s1970_s9 + $0x48] sm:$0xff] %v982_v40  ;;  %v1002_v52 = vadd.f32 %v1375_v50, %v1967_v53  ;;  %v1376_v54 = vpop.f32.mrb[20].mxu1 }
 0x15c   : > { %1031 = vst [vmem:[%s1970_s9 + $0x50] sm:$0xff] %v983_v43  ;;  %v593_v46 = vpop.f32.mrb[8].mxu0  ;;  %v1377_v56 = vpop.f32.mrb[21].mxu1 }
 0x15d   : > { %v985_v48 = vadd.f32 %v1978_v9, %v593_v46  ;;  %v595_v49 = vpop.f32.mrb[9].mxu0  ;;  %1050 = vst [vmem:[%s1970_s9 + $0xe8] sm:$0xff] %v1002_v52  ;;  %v1378_v59 = vadd.f32 %v1377_v56, %v1376_v54 }
 0x15e   : > { %v986_v51 = vadd.f32 %v1981_v11, %v595_v49 }
 0x15f   : > { %1033 = vst [vmem:[%s1970_s9 + $0x60] sm:$0xff] %v985_v48  ;;  %v1005_v61 = vadd.f32 %v1378_v59, %v1967_v53  ;;  %v1379_v62 = vpop.f32.mrb[22].mxu1 }
 0x160   : > { %1034 = vst [vmem:[%s1970_s9 + $0x68] sm:$0xff] %v986_v51  ;;  %v599_v55 = vpop.f32.mrb[10].mxu0  ;;  %v1380_v0 = vpop.f32.mrb[23].mxu1 }
 0x161   : > { %v988_v57 = vadd.f32 %v1978_v9, %v599_v55  ;;  %v601_v58 = vpop.f32.mrb[11].mxu0  ;;  %1053 = vst [vmem:[%s1970_s9 + $0x100] sm:$0xff] %v1005_v61  ;;  %v1381_v3 = vadd.f32 %v1380_v0, %v1379_v62  ;;  %v1098_v61 = vld [vmem:[%s1970_s9 + $0x10] sm:$0xff] (%p2202_p9)  ;;  %v1102_v62 = vld [vmem:[%s1970_s9 + $0x20] sm:$0xff] (%p2202_p9) }
 0x162   : > { %v989_v60 = vadd.f32 %v1981_v11, %v601_v58  ;;  %v1106_v0 = vld [vmem:[%s1970_s9 + $0x30] sm:$0xff] (%p2202_p9)  ;;  %1099 = vst [vmem:[%s2083_s23 + $0x10] sm:$0xff] (%p2202_p9), %v1098_v61  ;;  %1103 = vst [vmem:[%s2083_s23 + $0x38] sm:$0xff] (%p2202_p9), %v1102_v62 }
 0x163   : > { %1036 = vst [vmem:[%s1970_s9 + $0x78] sm:$0xff] %v988_v57  ;;  %v1008_v5 = vadd.f32 %v1381_v3, %v1967_v53  ;;  %v1382_v6 = vpop.f32.mrb[24].mxu1  ;;  %1107 = vst [vmem:[%s2083_s23 + $0x60] sm:$0xff] (%p2202_p9), %v1106_v0  ;;  %v1112_v3 = vld [vmem:[%s1970_s9 + $0x48] sm:$0xff] (%p2202_p9) }
 0x164   : > { %1037 = vst [vmem:[%s1970_s9 + $0x80] sm:$0xff] %v989_v60  ;;  %v605_v63 = vpop.f32.mrb[12].mxu0  ;;  %v1383_v8 = vpop.f32.mrb[25].mxu1  ;;  %v1096_v60 = vld [vmem:[%s1970_s9 + $0x8] sm:$0xff] (%p2202_p9)  ;;  %1113 = vst [vmem:[%s2083_s23 + $0x90] sm:$0xff] (%p2202_p9), %v1112_v3 }
 0x165   : > { %v991_v1 = vadd.f32 %v1978_v9, %v605_v63  ;;  %v607_v2 = vpop.f32.mrb[13].mxu0  ;;  %1056 = vst [vmem:[%s1970_s9 + $0x118] sm:$0xff] %v1008_v5  ;;  %v1384_v13 = vadd.f32 %v1383_v8, %v1382_v6  ;;  %v1104_v63 = vld [vmem:[%s1970_s9 + $0x28] sm:$0xff] (%p2202_p9)  ;;  %1097 = vst [vmem:[%s2083_s23 + $0x8] sm:$0xff] (%p2202_p9), %v1096_v60  ;;  %v1116_v5 = vld [vmem:[%s1970_s9 + $0x58] sm:$0xff] (%p2202_p9) }
 0x166   : > { %v992_v4 = vadd.f32 %v1981_v11, %v607_v2  ;;  %v1110_v2 = vld [vmem:[%s1970_s9 + $0x40] sm:$0xff] (%p2202_p9)  ;;  %1105 = vst [vmem:[%s2083_s23 + $0x40] sm:$0xff] (%p2202_p9), %v1104_v63  ;;  %1117 = vst [vmem:[%s2083_s23 + $0xa0] sm:$0xff] (%p2202_p9), %v1116_v5  ;;  %v1122_v8 = vld [vmem:[%s1970_s9 + $0x70] sm:$0xff] (%p2202_p9) }
 0x167   : > { %1039 = vst [vmem:[%s1970_s9 + $0x90] sm:$0xff] %v991_v1  ;;  %v1011_v15 = vadd.f32 %v1384_v13, %v1967_v53  ;;  %v1385_v16 = vpop.f32.mrb[26].mxu1  ;;  %v1108_v1 = vld [vmem:[%s1970_s9 + $0x38] sm:$0xff] (%p2202_p9)  ;;  %1111 = vst [vmem:[%s2083_s23 + $0x70] sm:$0xff] (%p2202_p9), %v1110_v2  ;;  %v1118_v6 = vld [vmem:[%s1970_s9 + $0x60] sm:$0xff] (%p2202_p9) }
 0x168   : > { %1040 = vst [vmem:[%s1970_s9 + $0x98] sm:$0xff] %v992_v4  ;;  %v611_v7 = vpop.f32.mrb[14].mxu0  ;;  %v1386_v18 = vpop.f32.mrb[27].mxu1  ;;  %1109 = vst [vmem:[%s2083_s23 + $0x68] sm:$0xff] (%p2202_p9), %v1108_v1  ;;  %v1114_v4 = vld [vmem:[%s1970_s9 + $0x50] sm:$0xff] (%p2202_p9)  ;;  %v1128_v13 = vld [vmem:[%s1970_s9 + $0x88] sm:$0xff] (%p2202_p9) }
 0x169   : > { %v994_v10 = vadd.f32 %v1978_v9, %v611_v7  ;;  %v613_v12 = vpop.f32.mrb[15].mxu0  ;;  %1059 = vst [vmem:[%s1970_s9 + $0x130] sm:$0xff] %v1011_v15  ;;  %v1387_v21 = vadd.f32 %v1386_v18, %v1385_v16  ;;  %1115 = vst [vmem:[%s2083_s23 + $0x98] sm:$0xff] (%p2202_p9), %v1114_v4  ;;  %v1120_v7 = vld [vmem:[%s1970_s9 + $0x68] sm:$0xff] (%p2202_p9)  ;;  %v1134_v16 = vld [vmem:[%s1970_s9 + $0xa0] sm:$0xff] (%p2202_p9) }
 0x16a   : > { %v995_v14 = vadd.f32 %v1981_v11, %v613_v12  ;;  %1119 = vst [vmem:[%s2083_s23 + $0xc0] sm:$0xff] (%p2202_p9), %v1118_v6  ;;  %1121 = vst [vmem:[%s2083_s23 + $0xc8] sm:$0xff] (%p2202_p9), %v1120_v7 }
 0x16b   : > { %1042 = vst [vmem:[%s1970_s9 + $0xa8] sm:$0xff] %v994_v10  ;;  %v1014_v23 = vadd.f32 %v1387_v21, %v1967_v53  ;;  %v1388_v24 = vpop.f32.mrb[28].mxu1  ;;  %1123 = vst [vmem:[%s2083_s23 + $0xd0] sm:$0xff] (%p2202_p9), %v1122_v8  ;;  %v1124_v10 = vld [vmem:[%s1970_s9 + $0x78] sm:$0xff] (%p2202_p9)  ;;  %v1126_v12 = vld [vmem:[%s1970_s9 + $0x80] sm:$0xff] (%p2202_p9) }
 0x16c   : > { %1043 = vst [vmem:[%s1970_s9 + $0xb0] sm:$0xff] %v995_v14  ;;  %v617_v17 = vpop.f32.mrb[16].mxu0  ;;  %v1389_v26 = vpop.f32.mrb[29].mxu1  ;;  %1125 = vst [vmem:[%s2083_s23 + $0xf0] sm:$0xff] (%p2202_p9), %v1124_v10 }
 0x16d   : > { %v997_v19 = vadd.f32 %v1978_v9, %v617_v17  ;;  %v619_v20 = vpop.f32.mrb[17].mxu0  ;;  %1062 = vst [vmem:[%s1970_s9 + $0x148] sm:$0xff] %v1014_v23  ;;  %v1390_v29 = vadd.f32 %v1389_v26, %v1388_v24  ;;  %1127 = vst [vmem:[%s2083_s23 + $0xf8] sm:$0xff] (%p2202_p9), %v1126_v12 }
 0x16e   : > { %v998_v22 = vadd.f32 %v1981_v11, %v619_v20  ;;  %1129 = vst [vmem:[%s2083_s23 + $0x100] sm:$0xff] (%p2202_p9), %v1128_v13  ;;  %v1130_v14 = vld [vmem:[%s1970_s9 + $0x90] sm:$0xff] (%p2202_p9)  ;;  %1135 = vst [vmem:[%s2083_s23 + $0x130] sm:$0xff] (%p2202_p9), %v1134_v16 }
 0x16f   : > { %1045 = vst [vmem:[%s1970_s9 + $0xc0] sm:$0xff] %v997_v19  ;;  %v1017_v31 = vadd.f32 %v1390_v29, %v1967_v53  ;;  %v1391_v32 = vpop.f32.mrb[30].mxu1  ;;  %v1132_v15 = vld [vmem:[%s1970_s9 + $0x98] sm:$0xff] (%p2202_p9)  ;;  %1131 = vst [vmem:[%s2083_s23 + $0x120] sm:$0xff] (%p2202_p9), %v1130_v14 }
 0x170   : > { %1046 = vst [vmem:[%s1970_s9 + $0xc8] sm:$0xff] %v998_v22  ;;  %v623_v25 = vpop.f32.mrb[18].mxu0  ;;  %v1392_v34 = vpop.f32.mrb[31].mxu1  ;;  %1133 = vst [vmem:[%s2083_s23 + $0x128] sm:$0xff] (%p2202_p9), %v1132_v15  ;;  %v1140_v19 = vld [vmem:[%s1970_s9 + $0xb8] sm:$0xff] (%p2202_p9)  ;;  %v1146_v22 = vld [vmem:[%s1970_s9 + $0xd0] sm:$0xff] (%p2202_p9) }
 0x171   : > { %v1000_v27 = vadd.f32 %v1978_v9, %v623_v25  ;;  %v625_v28 = vpop.f32.mrb[19].mxu0  ;;  %1065 = vst [vmem:[%s1970_s9 + $0x160] sm:$0xff] %v1017_v31  ;;  %v1393_v37 = vadd.f32 %v1392_v34, %v1391_v32  ;;  %1141 = vst [vmem:[%s2083_s23 + $0x160] sm:$0xff] (%p2202_p9), %v1140_v19  ;;  %v1152_v25 = vld [vmem:[%s1970_s9 + $0xe8] sm:$0xff] (%p2202_p9)  ;;  %v1164_v31 = vld [vmem:[%s1970_s9 + $0x118] sm:$0xff] (%p2202_p9) }
 0x172   : > { %v1001_v30 = vadd.f32 %v1981_v11, %v625_v28  ;;  %v1136_v17 = vld [vmem:[%s1970_s9 + $0xa8] sm:$0xff] (%p2202_p9)  ;;  %1147 = vst [vmem:[%s2083_s23 + $0x190] sm:$0xff] (%p2202_p9), %v1146_v22  ;;  %1153 = vst [vmem:[%s2083_s23 + $0x1c0] sm:$0xff] (%p2202_p9), %v1152_v25  ;;  %v1158_v28 = vld [vmem:[%s1970_s9 + $0x100] sm:$0xff] (%p2202_p9) }
 0x173   : > { %1048 = vst [vmem:[%s1970_s9 + $0xd8] sm:$0xff] %v1000_v27  ;;  %v1020_v39 = vadd.f32 %v1393_v37, %v1967_v53  ;;  %v1138_v18 = vld [vmem:[%s1970_s9 + $0xb0] sm:$0xff] (%p2202_p9)  ;;  %1137 = vst [vmem:[%s2083_s23 + $0x150] sm:$0xff] (%p2202_p9), %v1136_v17 }
 0x174   : > { %1049 = vst [vmem:[%s1970_s9 + $0xe0] sm:$0xff] %v1001_v30  ;;  %v629_v33 = vpop.f32.mrb[20].mxu0  ;;  %1139 = vst [vmem:[%s2083_s23 + $0x158] sm:$0xff] (%p2202_p9), %v1138_v18  ;;  %v1170_v34 = vld [vmem:[%s1970_s9 + $0x130] sm:$0xff] (%p2202_p9)  ;;  %v1176_v37 = vld [vmem:[%s1970_s9 + $0x148] sm:$0xff] (%p2202_p9) }
 0x175   : > { %v1003_v35 = vadd.f32 %v1978_v9, %v629_v33  ;;  %v631_v36 = vpop.f32.mrb[21].mxu0  ;;  %1068 = vst [vmem:[%s1970_s9 + $0x178] sm:$0xff] %v1020_v39  ;;  %1159 = vst [vmem:[%s2083_s23 + $0x1f0] sm:$0xff] (%p2202_p9), %v1158_v28 }
 0x176   : > { %v1004_v38 = vadd.f32 %v1981_v11, %v631_v36  ;;  %v1142_v20 = vld [vmem:[%s1970_s9 + $0xc0] sm:$0xff] (%p2202_p9)  ;;  %1165 = vst [vmem:[%s2083_s23 + $0x220] sm:$0xff] (%p2202_p9), %v1164_v31  ;;  %1171 = vst [vmem:[%s2083_s23 + $0x250] sm:$0xff] (%p2202_p9), %v1170_v34 }
 0x177   : > { %1051 = vst [vmem:[%s1970_s9 + $0xf0] sm:$0xff] %v1003_v35  ;;  %v1144_v21 = vld [vmem:[%s1970_s9 + $0xc8] sm:$0xff] (%p2202_p9)  ;;  %1143 = vst [vmem:[%s2083_s23 + $0x180] sm:$0xff] (%p2202_p9), %v1142_v20 }
 0x178   : > { %1052 = vst [vmem:[%s1970_s9 + $0xf8] sm:$0xff] %v1004_v38  ;;  %v635_v40 = vpop.f32.mrb[22].mxu0  ;;  %1145 = vst [vmem:[%s2083_s23 + $0x188] sm:$0xff] (%p2202_p9), %v1144_v21 }
 0x179   : > { %v1006_v41 = vadd.f32 %v1978_v9, %v635_v40  ;;  %v637_v42 = vpop.f32.mrb[23].mxu0  ;;  %1177 = vst [vmem:[%s2083_s23 + $0x280] sm:$0xff] (%p2202_p9), %v1176_v37  ;;  %v1182_v40 = vld [vmem:[%s1970_s9 + $0x160] sm:$0xff] (%p2202_p9) }
 0x17a   : > { %v1007_v43 = vadd.f32 %v1981_v11, %v637_v42  ;;  %v1148_v23 = vld [vmem:[%s1970_s9 + $0xd8] sm:$0xff] (%p2202_p9)  ;;  %1183 = vst [vmem:[%s2083_s23 + $0x2b0] sm:$0xff] (%p2202_p9), %v1182_v40 }
 0x17b   : > { %1054 = vst [vmem:[%s1970_s9 + $0x108] sm:$0xff] %v1006_v41  ;;  %v1150_v24 = vld [vmem:[%s1970_s9 + $0xe0] sm:$0xff] (%p2202_p9)  ;;  %1149 = vst [vmem:[%s2083_s23 + $0x1b0] sm:$0xff] (%p2202_p9), %v1148_v23 }
 0x17c   : > { %1055 = vst [vmem:[%s1970_s9 + $0x110] sm:$0xff] %v1007_v43  ;;  %v641_v44 = vpop.f32.mrb[24].mxu0  ;;  %1151 = vst [vmem:[%s2083_s23 + $0x1b8] sm:$0xff] (%p2202_p9), %v1150_v24  ;;  %v1188_v43 = vld [vmem:[%s1970_s9 + $0x178] sm:$0xff] (%p2202_p9) }
 0x17d   : > { %v1009_v45 = vadd.f32 %v1978_v9, %v641_v44  ;;  %v643_v46 = vpop.f32.mrb[25].mxu0  ;;  %1189 = vst [vmem:[%s2083_s23 + $0x2e0] sm:$0xff] (%p2202_p9), %v1188_v43 }
 0x17e   : > { %v1010_v53 = vadd.f32 %v1981_v11, %v643_v46  ;;  %v1154_v26 = vld [vmem:[%s1970_s9 + $0xf0] sm:$0xff] (%p2202_p9) }
 0x17f   : > { %1057 = vst [vmem:[%s1970_s9 + $0x120] sm:$0xff] %v1009_v45  ;;  %v1156_v27 = vld [vmem:[%s1970_s9 + $0xf8] sm:$0xff] (%p2202_p9)  ;;  %1155 = vst [vmem:[%s2083_s23 + $0x1e0] sm:$0xff] (%p2202_p9), %v1154_v26 }
 0x180   : > { %1058 = vst [vmem:[%s1970_s9 + $0x128] sm:$0xff] %v1010_v53  ;;  %v647_v47 = vpop.f32.mrb[26].mxu0  ;;  %1157 = vst [vmem:[%s2083_s23 + $0x1e8] sm:$0xff] (%p2202_p9), %v1156_v27 }
 0x181   : > { %v1012_v48 = vadd.f32 %v1978_v9, %v647_v47  ;;  %v649_v49 = vpop.f32.mrb[27].mxu0 }
 0x182   : > { %v1013_v50 = vadd.f32 %v1981_v11, %v649_v49  ;;  %v1160_v29 = vld [vmem:[%s1970_s9 + $0x108] sm:$0xff] (%p2202_p9) }
 0x183   : > { %1060 = vst [vmem:[%s1970_s9 + $0x138] sm:$0xff] %v1012_v48  ;;  %v1162_v30 = vld [vmem:[%s1970_s9 + $0x110] sm:$0xff] (%p2202_p9)  ;;  %1161 = vst [vmem:[%s2083_s23 + $0x210] sm:$0xff] (%p2202_p9), %v1160_v29 }
 0x184   : > { %1061 = vst [vmem:[%s1970_s9 + $0x140] sm:$0xff] %v1013_v50  ;;  %v653_v51 = vpop.f32.mrb[28].mxu0  ;;  %1163 = vst [vmem:[%s2083_s23 + $0x218] sm:$0xff] (%p2202_p9), %v1162_v30 }
 0x185   : > { %v1015_v52 = vadd.f32 %v1978_v9, %v653_v51  ;;  %v655_v54 = vpop.f32.mrb[29].mxu0 }
 0x186   : > { %v1016_v55 = vadd.f32 %v1981_v11, %v655_v54  ;;  %1075 = sbr.rel (!%p2202_p9) target bundleno = 405 (0x195), region = 48  ;;  %v1166_v32 = vld [vmem:[%s1970_s9 + $0x120] sm:$0xff] (%p2202_p9) }
 0x187   : > { %1063 = vst [vmem:[%s1970_s9 + $0x150] sm:$0xff] %v1015_v52  ;;  %v1168_v33 = vld [vmem:[%s1970_s9 + $0x128] sm:$0xff] (%p2202_p9)  ;;  %1167 = vst [vmem:[%s2083_s23 + $0x240] sm:$0xff] (%p2202_p9), %v1166_v32 }
 0x188   : > { %1064 = vst [vmem:[%s1970_s9 + $0x158] sm:$0xff] %v1016_v55  ;;  %v659_v56 = vpop.f32.mrb[30].mxu0  ;;  %1169 = vst [vmem:[%s2083_s23 + $0x248] sm:$0xff] (%p2202_p9), %v1168_v33 }
 0x189   : > { %v1018_v57 = vadd.f32 %v1978_v9, %v659_v56  ;;  %v661_v58 = vpop.f32.mrb[31].mxu0  ;;  %v1094_v9 = vld [vmem:[%s1970_s9] sm:$0xff] (%p2202_p9) }
 0x18a   : > { %v1019_v59 = vadd.f32 %v1981_v11, %v661_v58  ;;  %v1100_v11 = vld [vmem:[%s1970_s9 + $0x18] sm:$0xff] (%p2202_p9)  ;;  %1095 = vst [vmem:[%s2083_s23] sm:$0xff] (%p2202_p9), %v1094_v9 }
 0x18b   : > { %1066 = vst [vmem:[%s1970_s9 + $0x168] sm:$0xff] %v1018_v57  ;;  %1101 = vst [vmem:[%s2083_s23 + $0x30] sm:$0xff] (%p2202_p9), %v1100_v11  ;;  %v1172_v35 = vld [vmem:[%s1970_s9 + $0x138] sm:$0xff] (%p2202_p9)  ;;  %v1174_v36 = vld [vmem:[%s1970_s9 + $0x140] sm:$0xff] (%p2202_p9) }
 0x18c   : > { %1067 = vst [vmem:[%s1970_s9 + $0x170] sm:$0xff] %v1019_v59  ;;  %1173 = vst [vmem:[%s2083_s23 + $0x270] sm:$0xff] (%p2202_p9), %v1172_v35 }
 0x18d   : > { %1175 = vst [vmem:[%s2083_s23 + $0x278] sm:$0xff] %v1174_v36 }
 0x18e   : > { %v1178_v38 = vld [vmem:[%s1970_s9 + $0x150] sm:$0xff] }
 0x18f   : > { %v1180_v39 = vld [vmem:[%s1970_s9 + $0x158] sm:$0xff]  ;;  %1179 = vst [vmem:[%s2083_s23 + $0x2a0] sm:$0xff] %v1178_v38 }
 0x190   : > { %1181 = vst [vmem:[%s2083_s23 + $0x2a8] sm:$0xff] %v1180_v39 }
 0x192   : > { %v1184_v41 = vld [vmem:[%s1970_s9 + $0x168] sm:$0xff] }
 0x193   : > { %v1186_v42 = vld [vmem:[%s1970_s9 + $0x170] sm:$0xff]  ;;  %1185 = vst [vmem:[%s2083_s23 + $0x2d0] sm:$0xff] %v1184_v41 }
 0x194   : > { %1187 = vst [vmem:[%s2083_s23 + $0x2d8] sm:$0xff] %v1186_v42 }
 0x195 PF: > { %s16_s17 = sadd.s32 1, %s1631_s17   ;;  %s2203_s12 = smov %s1615_s13 }
 0x196   : > { %p13_p11 = scmp.ge.s32.totalorder %s16_s17, 4   ;;  %s2204_s13 = smov %s1619_s14 }
 0x197   : > { %s2205_s14 = smov %s1705_s24  ;;  %s2206_s15 = smov %s1627_s16 }
 0x198   : > { %s2207_s16 = smov %s2209_s19  ;;  %15 = sbr.rel (!%p13_p11) target bundleno = 4 (0x4), region = 109 }
 0x19f   :  { %1205 = vsyncpa [#allocation4], 1 }
 0x1a0   :  { %1207 = vsyncpa [#allocation4 + $0x1], 1 }

</bundles_post_ra>
